<compile_context>
chip_gen: v7x
topology: tpu7x:2x2x1
jax: 0.10.0
libtpu: 0.0.40
codegen_flags: <defaults>
</compile_context>

<pallas_src>
import math

import jax
import jax.numpy as jnp
from jax.experimental import pallas as pl
from jax.experimental.pallas import tpu as pltpu

# ---------------- small synthetic ViT config ----------------
BATCH = 2
IN_CH = 3
IMG = 16
PATCH = 4
GRID_HW = IMG // PATCH              # 4
NUM_PATCHES = GRID_HW * GRID_HW     # 16
SEQ = NUM_PATCHES + 1               # 17 (class token prepended)
HIDDEN = 32
NUM_HEADS = 4
HEAD_DIM = HIDDEN // NUM_HEADS      # 8
NUM_LAYERS = 2
MLP_DIM = 64
NUM_CLASSES = 1000                  # ViT head width, fed to out_layer: Linear(1000, 1)
LN_EPS = 1e-6
CPP = IN_CH * PATCH * PATCH         # 48

# ---------------- packed-blob row layout (shared by wrapper & kernel) ----------------
LANES = 128
# bf16 weight blob: every segment starts at lane 0, row offsets are multiples of 16.
WB_PATCH = 0                                   # (CPP, HIDDEN)      patch-embed weight
WB_QKV = WB_PATCH + CPP                        # L x (HIDDEN, 3H)   QKV projection (Q pre-scaled)
WB_AO = WB_QKV + NUM_LAYERS * HIDDEN           # L x (HIDDEN, H)    attention out-proj
WB_W1 = WB_AO + NUM_LAYERS * HIDDEN            # L x (HIDDEN, MLP)  MLP up-proj
WB_W2 = WB_W1 + NUM_LAYERS * HIDDEN            # L x (MLP, HIDDEN)  MLP down-proj
WB_ROWS = WB_W2 + NUM_LAYERS * MLP_DIM         # 368 rows total
# f32 params blob: embeddings, LN params, biases, fused head.
PB_EMBED = 0                                   # rows 0..SEQ-1 : pos + conv_b (+ cls row 0)
PB_LAYER0 = ((SEQ + 7) // 8) * 8               # 24
PB_LROWS = 8                                   # per layer: ln1_g, ln1_b, qkv_b, ao_b, ln2_g, ln2_b, b1, b2
PB_FINAL = PB_LAYER0 + PB_LROWS * NUM_LAYERS   # 40: lnf_g, lnf_b, fused head w, fused head b
PB_ROWS = ((PB_FINAL + 4 + 7) // 8) * 8        # 48


# ---------------- fused Pallas kernel ----------------
def _fused_vit_kernel(patches_ref, wblob_ref, pblob_ref, o_ref):
    f32 = jnp.float32
    bf16 = jnp.bfloat16

    def layernorm(x, g, b):
        mu = jnp.mean(x, axis=-1, keepdims=True)
        var = jnp.mean(jnp.square(x - mu), axis=-1, keepdims=True)
        return (x - mu) * jax.lax.rsqrt(var + LN_EPS) * g + b

    def mm(x, w):  # bf16 MXU inputs, f32 accumulation; elementwise math stays f32.
        return jnp.dot(x.astype(bf16), w, preferred_element_type=f32)

    W = wblob_ref   # (WB_ROWS, 128) bf16
    P = pblob_ref   # (PB_ROWS, 128) f32

    # Patch embedding + class token + positional embedding.
    # Row 0 of patches is zero, so row 0 of z becomes embed_add[0] = cls_token + pos[0];
    # rows 1.. get patch_embed + conv_b + pos (folded into embed_add).
    w_patch = W[WB_PATCH:WB_PATCH + CPP, 0:HIDDEN]                       # (48, 32) bf16
    embed_add = P[PB_EMBED:PB_EMBED + SEQ, 0:HIDDEN]                     # (17, 32) f32
    z = mm(patches_ref[0], w_patch) + embed_add                          # (17, 32) f32

    for l in range(NUM_LAYERS):
        base = PB_LAYER0 + PB_LROWS * l
        ln1_g = P[base + 0:base + 1, 0:HIDDEN]
        ln1_b = P[base + 1:base + 2, 0:HIDDEN]
        qkv_b = P[base + 2:base + 3, 0:3 * HIDDEN]
        ao_b = P[base + 3:base + 4, 0:HIDDEN]
        ln2_g = P[base + 4:base + 5, 0:HIDDEN]
        ln2_b = P[base + 5:base + 6, 0:HIDDEN]
        b1 = P[base + 6:base + 7, 0:MLP_DIM]
        b2 = P[base + 7:base + 8, 0:HIDDEN]

        qkv_w = W[WB_QKV + l * HIDDEN:WB_QKV + (l + 1) * HIDDEN, 0:3 * HIDDEN]   # (32, 96)
        ao_w = W[WB_AO + l * HIDDEN:WB_AO + (l + 1) * HIDDEN, 0:HIDDEN]          # (32, 32)
        w1 = W[WB_W1 + l * HIDDEN:WB_W1 + (l + 1) * HIDDEN, 0:MLP_DIM]           # (32, 64)
        w2 = W[WB_W2 + l * MLP_DIM:WB_W2 + (l + 1) * MLP_DIM, 0:HIDDEN]          # (64, 32)

        # ---- multi-head self-attention (pre-LN); heads batched in one dot_general ----
        h = layernorm(z, ln1_g, ln1_b)
        qkv = mm(h, qkv_w) + qkv_b                                       # (17, 96); Q pre-scaled
        q3 = jnp.stack([qkv[:, hh * HEAD_DIM:(hh + 1) * HEAD_DIM]
                        for hh in range(NUM_HEADS)])                     # (4, 17, 8)
        k3 = jnp.stack([qkv[:, HIDDEN + hh * HEAD_DIM:HIDDEN + (hh + 1) * HEAD_DIM]
                        for hh in range(NUM_HEADS)])                     # (4, 17, 8)
        v3 = jnp.stack([qkv[:, 2 * HIDDEN + hh * HEAD_DIM:2 * HIDDEN + (hh + 1) * HEAD_DIM]
                        for hh in range(NUM_HEADS)])                     # (4, 17, 8)
        s = jnp.einsum("hqd,hkd->hqk", q3.astype(bf16), k3.astype(bf16),
                       preferred_element_type=f32)                       # (4, 17, 17)
        m = jnp.max(s, axis=-1, keepdims=True)
        e = jnp.exp(s - m)
        p = e * pl.reciprocal(jnp.sum(e, axis=-1, keepdims=True), approx=True)
        o3 = jnp.einsum("hqk,hkd->hqd", p.astype(bf16), v3.astype(bf16),
                        preferred_element_type=f32)                      # (4, 17, 8)
        # Fold each head's slice of the output projection (sublane-row slices, no lane concat).
        attn = mm(o3[0], ao_w[0:HEAD_DIM, :])
        for hh in range(1, NUM_HEADS):
            attn = attn + mm(o3[hh], ao_w[hh * HEAD_DIM:(hh + 1) * HEAD_DIM, :])
        z = z + attn + ao_b

        # ---- MLP (pre-LN, GELU) ----
        h2 = layernorm(z, ln2_g, ln2_b)
        m1 = mm(h2, w1) + b1
        # TODO(synk): torchvision nn.GELU() is exact erf-GELU; tanh approximation is used
        # here for a guaranteed Mosaic elementwise lowering.
        m1 = jax.nn.gelu(m1, approximate=True)
        z = z + mm(m1, w2) + b2

    # ---- final LN on the class-token row only, fused (head @ out_layer) + sigmoid ----
    lnf_g = P[PB_FINAL + 0:PB_FINAL + 1, 0:HIDDEN]
    lnf_b = P[PB_FINAL + 1:PB_FINAL + 2, 0:HIDDEN]
    w_hf = P[PB_FINAL + 2:PB_FINAL + 3, 0:HIDDEN]       # (1, 32) = head_w.T @ out_w.T  (f32)
    b_hf = P[PB_FINAL + 3:PB_FINAL + 4, 0:1]            # (1, 1)  = head_b @ out_w.T + out_b

    cls = layernorm(z[0:1, :], lnf_g, lnf_b)                             # (1, 32)
    val = jnp.sum(cls * w_hf, axis=-1, keepdims=True) + b_hf             # (1, 1)
    val = 1.0 / (1.0 + jnp.exp(-val))                                    # exact sigmoid
    # Dropout(p=0.0) is the identity in eval -> no-op.
    o_ref[...] = jnp.broadcast_to(val.reshape(1, 1, 1), o_ref.shape)     # lane-dense store


# ---------------- parameters (deterministic, synthetic) ----------------
def init_params(key):
    kit = iter(jax.random.split(key, 64))

    def nrm(shape, scale=0.02):
        return (scale * jax.random.normal(next(kit), shape)).astype(jnp.float32)

    zeros = lambda shape: jnp.zeros(shape, jnp.float32)
    ones = lambda shape: jnp.ones(shape, jnp.float32)

    params = dict(
        conv_w=nrm((HIDDEN, IN_CH, PATCH, PATCH)),     # patch-embed conv (stride=patch)
        conv_b=zeros((HIDDEN,)),
        cls_token=nrm((1, 1, HIDDEN)),
        pos_emb=nrm((1, SEQ, HIDDEN)),
        lnf_g=ones((HIDDEN,)),
        lnf_b=zeros((HIDDEN,)),
        head_w=nrm((NUM_CLASSES, HIDDEN)),             # ViT classification head -> 1000
        head_b=zeros((NUM_CLASSES,)),
        out_w=nrm((1, NUM_CLASSES)),                   # nn.Linear(1000, 1)
        out_b=zeros((1,)),
        layers=[],
    )
    for _ in range(NUM_LAYERS):
        params["layers"].append(dict(
            ln1_g=ones((HIDDEN,)), ln1_b=zeros((HIDDEN,)),
            in_w=nrm((3 * HIDDEN, HIDDEN)), in_b=zeros((3 * HIDDEN,)),
            out_w=nrm((HIDDEN, HIDDEN)), out_b=zeros((HIDDEN,)),
            ln2_g=ones((HIDDEN,)), ln2_b=zeros((HIDDEN,)),
            w1=nrm((MLP_DIM, HIDDEN)), b1=zeros((MLP_DIM,)),
            w2=nrm((HIDDEN, MLP_DIM)), b2=zeros((HIDDEN,)),
        ))
    return params


# ---------------- forward ----------------
def activated_vit_forward(params, x):
    """x: (B, C, H, W) NCHW float32 -> (B, 1) sigmoid output."""
    B, C, H_img, W_img = x.shape
    p = PATCH
    gh, gw = H_img // p, W_img // p
    n_patches = gh * gw
    cpp = C * p * p
    seq = n_patches + 1

    # Patchify: stride-p conv == per-patch flatten (c, ph, pw order) followed by matmul.
    patches = (x.reshape(B, C, gh, p, gw, p)
                 .transpose(0, 2, 4, 1, 3, 5)
                 .reshape(B, n_patches, cpp))
    # Prepend a zero row so the patch matmul directly emits a (SEQ, H) token matrix.
    patches_ext = jnp.pad(patches, ((0, 0), (1, 0), (0, 0))).astype(jnp.bfloat16)

    def stack(name):
        return jnp.stack([lp[name] for lp in params["layers"]])

    f32 = jnp.float32
    scale = 1.0 / math.sqrt(HEAD_DIM)
    # Fold the attention scale into the Q columns of the QKV projection (weight + bias).
    qscale = jnp.concatenate([jnp.full((HIDDEN,), scale, f32),
                              jnp.ones((2 * HIDDEN,), f32)])

    w_patch = params["conv_w"].reshape(HIDDEN, cpp).T                          # (48, 32)
    qkv_w = jnp.transpose(stack("in_w"), (0, 2, 1)) * qscale[None, None, :]    # (L, 32, 96)
    ao_w = jnp.transpose(stack("out_w"), (0, 2, 1))                            # (L, 32, 32)
    w1 = jnp.transpose(stack("w1"), (0, 2, 1))                                 # (L, 32, 64)
    w2 = jnp.transpose(stack("w2"), (0, 2, 1))                                 # (L, 64, 32)

    # ---- single bf16 weight blob ----
    wblob = jnp.zeros((WB_ROWS, LANES), f32)
    wblob = wblob.at[WB_PATCH:WB_PATCH + CPP, :HIDDEN].set(w_patch)
    for l in range(NUM_LAYERS):
        wblob = wblob.at[WB_QKV + l * HIDDEN:WB_QKV + (l + 1) * HIDDEN, :3 * HIDDEN].set(qkv_w[l])
        wblob = wblob.at[WB_AO + l * HIDDEN:WB_AO + (l + 1) * HIDDEN, :HIDDEN].set(ao_w[l])
        wblob = wblob.at[WB_W1 + l * HIDDEN:WB_W1 + (l + 1) * HIDDEN, :MLP_DIM].set(w1[l])
        wblob = wblob.at[WB_W2 + l * MLP_DIM:WB_W2 + (l + 1) * MLP_DIM, :HIDDEN].set(w2[l])
    wblob = wblob.astype(jnp.bfloat16)

    # ---- single f32 params blob (embeddings, LN params, biases, fused head) ----
    pos = params["pos_emb"][0]                                            # (17, 32)
    cls_tok = params["cls_token"][0, 0]                                   # (32,)
    # embed_add row 0 = cls_token + pos[0] (no conv bias); rows 1.. = conv_b + pos.
    embed_add = (pos + params["conv_b"][None, :]).at[0].set(pos[0] + cls_tok)

    qkv_b = stack("in_b") * qscale[None, :]                               # (L, 96)

    # Fuse head: Linear(H,1000) followed by out_layer Linear(1000,1), contracted in float32.
    w_hf = (params["head_w"].T @ params["out_w"].T)[:, 0]                 # (32,)
    b_hf = jnp.dot(params["head_b"], params["out_w"][0]) + params["out_b"][0]

    pblob = jnp.zeros((PB_ROWS, LANES), f32)
    pblob = pblob.at[PB_EMBED:PB_EMBED + SEQ, :HIDDEN].set(embed_add)
    for l, lp in enumerate(params["layers"]):
        base = PB_LAYER0 + PB_LROWS * l
        pblob = pblob.at[base + 0, :HIDDEN].set(lp["ln1_g"])
        pblob = pblob.at[base + 1, :HIDDEN].set(lp["ln1_b"])
        pblob = pblob.at[base + 2, :3 * HIDDEN].set(qkv_b[l])
        pblob = pblob.at[base + 3, :HIDDEN].set(lp["out_b"])
        pblob = pblob.at[base + 4, :HIDDEN].set(lp["ln2_g"])
        pblob = pblob.at[base + 5, :HIDDEN].set(lp["ln2_b"])
        pblob = pblob.at[base + 6, :MLP_DIM].set(lp["b1"])
        pblob = pblob.at[base + 7, :HIDDEN].set(lp["b2"])
    pblob = pblob.at[PB_FINAL + 0, :HIDDEN].set(params["lnf_g"])
    pblob = pblob.at[PB_FINAL + 1, :HIDDEN].set(params["lnf_b"])
    pblob = pblob.at[PB_FINAL + 2, :HIDDEN].set(w_hf)
    pblob = pblob.at[PB_FINAL + 3, 0].set(b_hf)

    out3 = pl.pallas_call(
        _fused_vit_kernel,
        out_shape=jax.ShapeDtypeStruct((B, 1, 128), jnp.float32),
        grid=(B,),
        in_specs=[
            pl.BlockSpec((1, seq, cpp), lambda b: (b, 0, 0)),          # per-batch patch block
            pl.BlockSpec((WB_ROWS, LANES), lambda b: (0, 0)),          # bf16 weights (DMA'd once)
            pl.BlockSpec((PB_ROWS, LANES), lambda b: (0, 0)),          # f32 params   (DMA'd once)
        ],
        out_specs=pl.BlockSpec((1, 1, 128), lambda b: (b, 0, 0)),
        # Batch-parallel grid: splits across v7x's two TensorCores; on single-TC v5e/v6e
        # the extra grid step only re-fetches the small per-batch patch block.
        compiler_params=pltpu.CompilerParams(dimension_semantics=("parallel",)),
    )(patches_ext, wblob, pblob)

    return out3[:, 0, :1]                                                # (B, 1)


if __name__ == "__main__":
    key = jax.random.PRNGKey(0)
    pkey, xkey = jax.random.split(key)
    params = init_params(pkey)
    x = jax.random.normal(xkey, (BATCH, IN_CH, IMG, IMG), dtype=jnp.float32)

    fwd = jax.jit(activated_vit_forward)
    out = jax.block_until_ready(fwd(params, x))

    assert out.shape == (BATCH, 1), out.shape
    assert out.dtype == jnp.float32
    assert bool(jnp.all((out >= 0.0) & (out <= 1.0)))
    print("KERNEL_OK")
</pallas_src>

<mosaic_0001>
module attributes {stable_mosaic.version = 11 : i64} {
  func.func @_fused_vit_kernel(%arg0: i32, %arg1: memref<1x17x48xbf16, #tpu.memory_space<vmem>>, %arg2: memref<368x128xbf16, #tpu.memory_space<vmem>>, %arg3: memref<48x128xf32, #tpu.memory_space<vmem>>, %arg4: memref<1x1x128xf32, #tpu.memory_space<vmem>>) attributes {dimension_semantics = [#tpu.dimension_semantics<parallel>], iteration_bounds = array<i64: 2>, scalar_prefetch = 0 : i64, scratch_operands = 0 : i64, tpu.core_type = #tpu.core_type<tc>, window_params = [{transform_indices = @transform_0, window_bounds = array<i64: 1, 17, 48>}, {pipeline_mode = #tpu.pipeline_mode<synchronous>, transform_indices = @transform_1, window_bounds = array<i64: 368, 128>}, {pipeline_mode = #tpu.pipeline_mode<synchronous>, transform_indices = @transform_2, window_bounds = array<i64: 48, 128>}, {transform_indices = @transform_3, window_bounds = array<i64: 1, 1, 128>}]} {
    %c0 = arith.constant 0 : index
    %c0_0 = arith.constant 0 : index
    %0 = vector.load %arg2[%c0, %c0_0] : memref<368x128xbf16, #tpu.memory_space<vmem>>, vector<48x32xbf16>
    %c0_1 = arith.constant 0 : index
    %c0_2 = arith.constant 0 : index
    %1 = vector.load %arg3[%c0_1, %c0_2] : memref<48x128xf32, #tpu.memory_space<vmem>>, vector<17x32xf32>
    %c0_3 = arith.constant 0 : index
    %c0_4 = arith.constant 0 : index
    %c0_5 = arith.constant 0 : index
    %2 = vector.load %arg1[%c0_3, %c0_4, %c0_5] : memref<1x17x48xbf16, #tpu.memory_space<vmem>>, vector<1x17x48xbf16>
    %3 = vector.shape_cast %2 : vector<1x17x48xbf16> to vector<17x48xbf16>
    %cst = arith.constant dense<0.000000e+00> : vector<17x32xf32>
    %4 = tpu.matmul %3, %0, %cst {dimension_numbers = #tpu.dot_dimension_numbers<[1], [0], [0], [1], [0, 0, 1, 1], [], []>} : vector<17x48xbf16>, vector<48x32xbf16>, vector<17x32xf32> -> vector<17x32xf32>
    %5 = arith.addf %4, %1 : vector<17x32xf32>
    %c24 = arith.constant 24 : index
    %c0_6 = arith.constant 0 : index
    %6 = vector.load %arg3[%c24, %c0_6] : memref<48x128xf32, #tpu.memory_space<vmem>>, vector<1x32xf32>
    %c25 = arith.constant 25 : index
    %c0_7 = arith.constant 0 : index
    %7 = vector.load %arg3[%c25, %c0_7] : memref<48x128xf32, #tpu.memory_space<vmem>>, vector<1x32xf32>
    %c26 = arith.constant 26 : index
    %c0_8 = arith.constant 0 : index
    %8 = vector.load %arg3[%c26, %c0_8] : memref<48x128xf32, #tpu.memory_space<vmem>>, vector<1x96xf32>
    %c27 = arith.constant 27 : index
    %c0_9 = arith.constant 0 : index
    %9 = vector.load %arg3[%c27, %c0_9] : memref<48x128xf32, #tpu.memory_space<vmem>>, vector<1x32xf32>
    %c28 = arith.constant 28 : index
    %c0_10 = arith.constant 0 : index
    %10 = vector.load %arg3[%c28, %c0_10] : memref<48x128xf32, #tpu.memory_space<vmem>>, vector<1x32xf32>
    %c29 = arith.constant 29 : index
    %c0_11 = arith.constant 0 : index
    %11 = vector.load %arg3[%c29, %c0_11] : memref<48x128xf32, #tpu.memory_space<vmem>>, vector<1x32xf32>
    %c30 = arith.constant 30 : index
    %c0_12 = arith.constant 0 : index
    %12 = vector.load %arg3[%c30, %c0_12] : memref<48x128xf32, #tpu.memory_space<vmem>>, vector<1x64xf32>
    %c31 = arith.constant 31 : index
    %c0_13 = arith.constant 0 : index
    %13 = vector.load %arg3[%c31, %c0_13] : memref<48x128xf32, #tpu.memory_space<vmem>>, vector<1x32xf32>
    %c48 = arith.constant 48 : index
    %c0_14 = arith.constant 0 : index
    %14 = vector.load %arg2[%c48, %c0_14] : memref<368x128xbf16, #tpu.memory_space<vmem>>, vector<32x96xbf16>
    %c112 = arith.constant 112 : index
    %c0_15 = arith.constant 0 : index
    %15 = vector.load %arg2[%c112, %c0_15] : memref<368x128xbf16, #tpu.memory_space<vmem>>, vector<32x32xbf16>
    %c176 = arith.constant 176 : index
    %c0_16 = arith.constant 0 : index
    %16 = vector.load %arg2[%c176, %c0_16] : memref<368x128xbf16, #tpu.memory_space<vmem>>, vector<32x64xbf16>
    %c240 = arith.constant 240 : index
    %c0_17 = arith.constant 0 : index
    %17 = vector.load %arg2[%c240, %c0_17] : memref<368x128xbf16, #tpu.memory_space<vmem>>, vector<64x32xbf16>
    %cst_18 = arith.constant dense<0.000000e+00> : vector<17xf32>
    %18 = vector.multi_reduction <add>, %5, %cst_18 [1] : vector<17x32xf32> to vector<17xf32>
    %19 = vector.shape_cast %18 : vector<17xf32> to vector<17x1xf32>
    %cst_19 = arith.constant 3.200000e+01 : f32
    %20 = vector.broadcast %cst_19 : f32 to vector<17x1xf32>
    %21 = arith.divf %19, %20 : vector<17x1xf32>
    %22 = vector.broadcast %21 : vector<17x1xf32> to vector<17x32xf32>
    %23 = arith.subf %5, %22 : vector<17x32xf32>
    %24 = arith.mulf %23, %23 : vector<17x32xf32>
    %cst_20 = arith.constant dense<0.000000e+00> : vector<17xf32>
    %25 = vector.multi_reduction <add>, %24, %cst_20 [1] : vector<17x32xf32> to vector<17xf32>
    %26 = vector.shape_cast %25 : vector<17xf32> to vector<17x1xf32>
    %cst_21 = arith.constant 3.200000e+01 : f32
    %27 = vector.broadcast %cst_21 : f32 to vector<17x1xf32>
    %28 = arith.divf %26, %27 : vector<17x1xf32>
    %29 = vector.broadcast %21 : vector<17x1xf32> to vector<17x32xf32>
    %30 = arith.subf %5, %29 : vector<17x32xf32>
    %cst_22 = arith.constant 9.99999997E-7 : f32
    %31 = vector.broadcast %cst_22 : f32 to vector<17x1xf32>
    %32 = arith.addf %28, %31 : vector<17x1xf32>
    %33 = math.rsqrt %32 : vector<17x1xf32>
    %34 = vector.broadcast %33 : vector<17x1xf32> to vector<17x32xf32>
    %35 = arith.mulf %30, %34 : vector<17x32xf32>
    %36 = vector.broadcast %6 : vector<1x32xf32> to vector<17x32xf32>
    %37 = arith.mulf %35, %36 : vector<17x32xf32>
    %38 = vector.broadcast %7 : vector<1x32xf32> to vector<17x32xf32>
    %39 = arith.addf %37, %38 : vector<17x32xf32>
    %40 = arith.truncf %39 : vector<17x32xf32> to vector<17x32xbf16>
    %cst_23 = arith.constant dense<0.000000e+00> : vector<17x96xf32>
    %41 = tpu.matmul %40, %14, %cst_23 {dimension_numbers = #tpu.dot_dimension_numbers<[1], [0], [0], [1], [0, 0, 1, 1], [], []>} : vector<17x32xbf16>, vector<32x96xbf16>, vector<17x96xf32> -> vector<17x96xf32>
    %42 = vector.broadcast %8 : vector<1x96xf32> to vector<17x96xf32>
    %43 = arith.addf %41, %42 : vector<17x96xf32>
    %44 = vector.extract_strided_slice %43 {offsets = [0, 0], sizes = [17, 8], strides = [1, 1]} : vector<17x96xf32> to vector<17x8xf32>
    %45 = vector.extract_strided_slice %43 {offsets = [0, 8], sizes = [17, 8], strides = [1, 1]} : vector<17x96xf32> to vector<17x8xf32>
    %46 = vector.extract_strided_slice %43 {offsets = [0, 16], sizes = [17, 8], strides = [1, 1]} : vector<17x96xf32> to vector<17x8xf32>
    %47 = vector.extract_strided_slice %43 {offsets = [0, 24], sizes = [17, 8], strides = [1, 1]} : vector<17x96xf32> to vector<17x8xf32>
    %48 = vector.shape_cast %44 : vector<17x8xf32> to vector<1x17x8xf32>
    %49 = vector.shape_cast %45 : vector<17x8xf32> to vector<1x17x8xf32>
    %50 = vector.shape_cast %46 : vector<17x8xf32> to vector<1x17x8xf32>
    %51 = vector.shape_cast %47 : vector<17x8xf32> to vector<1x17x8xf32>
    %52 = tpu.concatenate %48, %49, %50, %51 in 0 : vector<1x17x8xf32>, vector<1x17x8xf32>, vector<1x17x8xf32>, vector<1x17x8xf32> -> vector<4x17x8xf32>
    %53 = vector.extract_strided_slice %43 {offsets = [0, 32], sizes = [17, 8], strides = [1, 1]} : vector<17x96xf32> to vector<17x8xf32>
    %54 = vector.extract_strided_slice %43 {offsets = [0, 40], sizes = [17, 8], strides = [1, 1]} : vector<17x96xf32> to vector<17x8xf32>
    %55 = vector.extract_strided_slice %43 {offsets = [0, 48], sizes = [17, 8], strides = [1, 1]} : vector<17x96xf32> to vector<17x8xf32>
    %56 = vector.extract_strided_slice %43 {offsets = [0, 56], sizes = [17, 8], strides = [1, 1]} : vector<17x96xf32> to vector<17x8xf32>
    %57 = vector.shape_cast %53 : vector<17x8xf32> to vector<1x17x8xf32>
    %58 = vector.shape_cast %54 : vector<17x8xf32> to vector<1x17x8xf32>
    %59 = vector.shape_cast %55 : vector<17x8xf32> to vector<1x17x8xf32>
    %60 = vector.shape_cast %56 : vector<17x8xf32> to vector<1x17x8xf32>
    %61 = tpu.concatenate %57, %58, %59, %60 in 0 : vector<1x17x8xf32>, vector<1x17x8xf32>, vector<1x17x8xf32>, vector<1x17x8xf32> -> vector<4x17x8xf32>
    %62 = vector.extract_strided_slice %43 {offsets = [0, 64], sizes = [17, 8], strides = [1, 1]} : vector<17x96xf32> to vector<17x8xf32>
    %63 = vector.extract_strided_slice %43 {offsets = [0, 72], sizes = [17, 8], strides = [1, 1]} : vector<17x96xf32> to vector<17x8xf32>
    %64 = vector.extract_strided_slice %43 {offsets = [0, 80], sizes = [17, 8], strides = [1, 1]} : vector<17x96xf32> to vector<17x8xf32>
    %65 = vector.extract_strided_slice %43 {offsets = [0, 88], sizes = [17, 8], strides = [1, 1]} : vector<17x96xf32> to vector<17x8xf32>
    %66 = vector.shape_cast %62 : vector<17x8xf32> to vector<1x17x8xf32>
    %67 = vector.shape_cast %63 : vector<17x8xf32> to vector<1x17x8xf32>
    %68 = vector.shape_cast %64 : vector<17x8xf32> to vector<1x17x8xf32>
    %69 = vector.shape_cast %65 : vector<17x8xf32> to vector<1x17x8xf32>
    %70 = tpu.concatenate %66, %67, %68, %69 in 0 : vector<1x17x8xf32>, vector<1x17x8xf32>, vector<1x17x8xf32>, vector<1x17x8xf32> -> vector<4x17x8xf32>
    %71 = arith.truncf %52 : vector<4x17x8xf32> to vector<4x17x8xbf16>
    %72 = arith.truncf %61 : vector<4x17x8xf32> to vector<4x17x8xbf16>
    "tpu.trace_start"() <{level = 10 : i32, message = "hqd,hkd->hqk"}> : () -> ()
    %cst_24 = arith.constant dense<0.000000e+00> : vector<4x17x17xf32>
    %73 = tpu.matmul %71, %72, %cst_24 {dimension_numbers = #tpu.dot_dimension_numbers<[2], [2], [1], [1], [0, 0, 0, 1, 1, 1], [0], [0]>} : vector<4x17x8xbf16>, vector<4x17x8xbf16>, vector<4x17x17xf32> -> vector<4x17x17xf32>
    "tpu.trace_stop"() : () -> ()
    %cst_25 = arith.constant dense<0xFF800000> : vector<4x17xf32>
    %74 = vector.multi_reduction <maximumf>, %73, %cst_25 [2] : vector<4x17x17xf32> to vector<4x17xf32>
    %75 = vector.shape_cast %74 : vector<4x17xf32> to vector<4x17x1xf32>
    %76 = vector.broadcast %75 : vector<4x17x1xf32> to vector<4x17x17xf32>
    %77 = arith.subf %73, %76 : vector<4x17x17xf32>
    %78 = math.exp %77 : vector<4x17x17xf32>
    %cst_26 = arith.constant dense<0.000000e+00> : vector<4x17xf32>
    %79 = vector.multi_reduction <add>, %78, %cst_26 [2] : vector<4x17x17xf32> to vector<4x17xf32>
    %80 = vector.shape_cast %79 : vector<4x17xf32> to vector<4x17x1xf32>
    %81 = tpu.reciprocal %80 {approx = true} : vector<4x17x1xf32> -> vector<4x17x1xf32>
    %82 = vector.broadcast %81 : vector<4x17x1xf32> to vector<4x17x17xf32>
    %83 = arith.mulf %78, %82 : vector<4x17x17xf32>
    %84 = arith.truncf %83 : vector<4x17x17xf32> to vector<4x17x17xbf16>
    %85 = arith.truncf %70 : vector<4x17x8xf32> to vector<4x17x8xbf16>
    "tpu.trace_start"() <{level = 10 : i32, message = "hqk,hkd->hqd"}> : () -> ()
    %cst_27 = arith.constant dense<0.000000e+00> : vector<4x17x8xf32>
    %86 = tpu.matmul %84, %85, %cst_27 {dimension_numbers = #tpu.dot_dimension_numbers<[2], [1], [1], [2], [0, 0, 0, 1, 1, 2], [0], [0]>} : vector<4x17x17xbf16>, vector<4x17x8xbf16>, vector<4x17x8xf32> -> vector<4x17x8xf32>
    "tpu.trace_stop"() : () -> ()
    %87 = vector.extract_strided_slice %86 {offsets = [0, 0, 0], sizes = [1, 17, 8], strides = [1, 1, 1]} : vector<4x17x8xf32> to vector<1x17x8xf32>
    %88 = vector.shape_cast %87 : vector<1x17x8xf32> to vector<17x8xf32>
    %89 = vector.extract_strided_slice %15 {offsets = [0, 0], sizes = [8, 32], strides = [1, 1]} : vector<32x32xbf16> to vector<8x32xbf16>
    %90 = arith.truncf %88 : vector<17x8xf32> to vector<17x8xbf16>
    %cst_28 = arith.constant dense<0.000000e+00> : vector<17x32xf32>
    %91 = tpu.matmul %90, %89, %cst_28 {dimension_numbers = #tpu.dot_dimension_numbers<[1], [0], [0], [1], [0, 0, 1, 1], [], []>} : vector<17x8xbf16>, vector<8x32xbf16>, vector<17x32xf32> -> vector<17x32xf32>
    %92 = vector.extract_strided_slice %86 {offsets = [1, 0, 0], sizes = [1, 17, 8], strides = [1, 1, 1]} : vector<4x17x8xf32> to vector<1x17x8xf32>
    %93 = vector.shape_cast %92 : vector<1x17x8xf32> to vector<17x8xf32>
    %94 = vector.extract_strided_slice %15 {offsets = [8, 0], sizes = [8, 32], strides = [1, 1]} : vector<32x32xbf16> to vector<8x32xbf16>
    %95 = arith.truncf %93 : vector<17x8xf32> to vector<17x8xbf16>
    %cst_29 = arith.constant dense<0.000000e+00> : vector<17x32xf32>
    %96 = tpu.matmul %95, %94, %cst_29 {dimension_numbers = #tpu.dot_dimension_numbers<[1], [0], [0], [1], [0, 0, 1, 1], [], []>} : vector<17x8xbf16>, vector<8x32xbf16>, vector<17x32xf32> -> vector<17x32xf32>
    %97 = arith.addf %91, %96 : vector<17x32xf32>
    %98 = vector.extract_strided_slice %86 {offsets = [2, 0, 0], sizes = [1, 17, 8], strides = [1, 1, 1]} : vector<4x17x8xf32> to vector<1x17x8xf32>
    %99 = vector.shape_cast %98 : vector<1x17x8xf32> to vector<17x8xf32>
    %100 = vector.extract_strided_slice %15 {offsets = [16, 0], sizes = [8, 32], strides = [1, 1]} : vector<32x32xbf16> to vector<8x32xbf16>
    %101 = arith.truncf %99 : vector<17x8xf32> to vector<17x8xbf16>
    %cst_30 = arith.constant dense<0.000000e+00> : vector<17x32xf32>
    %102 = tpu.matmul %101, %100, %cst_30 {dimension_numbers = #tpu.dot_dimension_numbers<[1], [0], [0], [1], [0, 0, 1, 1], [], []>} : vector<17x8xbf16>, vector<8x32xbf16>, vector<17x32xf32> -> vector<17x32xf32>
    %103 = arith.addf %97, %102 : vector<17x32xf32>
    %104 = vector.extract_strided_slice %86 {offsets = [3, 0, 0], sizes = [1, 17, 8], strides = [1, 1, 1]} : vector<4x17x8xf32> to vector<1x17x8xf32>
    %105 = vector.shape_cast %104 : vector<1x17x8xf32> to vector<17x8xf32>
    %106 = vector.extract_strided_slice %15 {offsets = [24, 0], sizes = [8, 32], strides = [1, 1]} : vector<32x32xbf16> to vector<8x32xbf16>
    %107 = arith.truncf %105 : vector<17x8xf32> to vector<17x8xbf16>
    %cst_31 = arith.constant dense<0.000000e+00> : vector<17x32xf32>
    %108 = tpu.matmul %107, %106, %cst_31 {dimension_numbers = #tpu.dot_dimension_numbers<[1], [0], [0], [1], [0, 0, 1, 1], [], []>} : vector<17x8xbf16>, vector<8x32xbf16>, vector<17x32xf32> -> vector<17x32xf32>
    %109 = arith.addf %103, %108 : vector<17x32xf32>
    %110 = arith.addf %5, %109 : vector<17x32xf32>
    %111 = vector.broadcast %9 : vector<1x32xf32> to vector<17x32xf32>
    %112 = arith.addf %110, %111 : vector<17x32xf32>
    %cst_32 = arith.constant dense<0.000000e+00> : vector<17xf32>
    %113 = vector.multi_reduction <add>, %112, %cst_32 [1] : vector<17x32xf32> to vector<17xf32>
    %114 = vector.shape_cast %113 : vector<17xf32> to vector<17x1xf32>
    %cst_33 = arith.constant 3.200000e+01 : f32
    %115 = vector.broadcast %cst_33 : f32 to vector<17x1xf32>
    %116 = arith.divf %114, %115 : vector<17x1xf32>
    %117 = vector.broadcast %116 : vector<17x1xf32> to vector<17x32xf32>
    %118 = arith.subf %112, %117 : vector<17x32xf32>
    %119 = arith.mulf %118, %118 : vector<17x32xf32>
    %cst_34 = arith.constant dense<0.000000e+00> : vector<17xf32>
    %120 = vector.multi_reduction <add>, %119, %cst_34 [1] : vector<17x32xf32> to vector<17xf32>
    %121 = vector.shape_cast %120 : vector<17xf32> to vector<17x1xf32>
    %cst_35 = arith.constant 3.200000e+01 : f32
    %122 = vector.broadcast %cst_35 : f32 to vector<17x1xf32>
    %123 = arith.divf %121, %122 : vector<17x1xf32>
    %124 = vector.broadcast %116 : vector<17x1xf32> to vector<17x32xf32>
    %125 = arith.subf %112, %124 : vector<17x32xf32>
    %cst_36 = arith.constant 9.99999997E-7 : f32
    %126 = vector.broadcast %cst_36 : f32 to vector<17x1xf32>
    %127 = arith.addf %123, %126 : vector<17x1xf32>
    %128 = math.rsqrt %127 : vector<17x1xf32>
    %129 = vector.broadcast %128 : vector<17x1xf32> to vector<17x32xf32>
    %130 = arith.mulf %125, %129 : vector<17x32xf32>
    %131 = vector.broadcast %10 : vector<1x32xf32> to vector<17x32xf32>
    %132 = arith.mulf %130, %131 : vector<17x32xf32>
    %133 = vector.broadcast %11 : vector<1x32xf32> to vector<17x32xf32>
    %134 = arith.addf %132, %133 : vector<17x32xf32>
    %135 = arith.truncf %134 : vector<17x32xf32> to vector<17x32xbf16>
    %cst_37 = arith.constant dense<0.000000e+00> : vector<17x64xf32>
    %136 = tpu.matmul %135, %16, %cst_37 {dimension_numbers = #tpu.dot_dimension_numbers<[1], [0], [0], [1], [0, 0, 1, 1], [], []>} : vector<17x32xbf16>, vector<32x64xbf16>, vector<17x64xf32> -> vector<17x64xf32>
    %137 = vector.broadcast %12 : vector<1x64xf32> to vector<17x64xf32>
    %138 = arith.addf %136, %137 : vector<17x64xf32>
    %139 = arith.mulf %138, %138 : vector<17x64xf32>
    %140 = arith.mulf %138, %139 : vector<17x64xf32>
    %cst_38 = arith.constant 4.471500e-02 : f32
    %141 = vector.broadcast %cst_38 : f32 to vector<17x64xf32>
    %142 = arith.mulf %141, %140 : vector<17x64xf32>
    %143 = arith.addf %138, %142 : vector<17x64xf32>
    %cst_39 = arith.constant 0.797884583 : f32
    %144 = vector.broadcast %cst_39 : f32 to vector<17x64xf32>
    %145 = arith.mulf %144, %143 : vector<17x64xf32>
    %146 = math.tanh %145 : vector<17x64xf32>
    %cst_40 = arith.constant 1.000000e+00 : f32
    %147 = vector.broadcast %cst_40 : f32 to vector<17x64xf32>
    %148 = arith.addf %147, %146 : vector<17x64xf32>
    %cst_41 = arith.constant 5.000000e-01 : f32
    %149 = vector.broadcast %cst_41 : f32 to vector<17x64xf32>
    %150 = arith.mulf %149, %148 : vector<17x64xf32>
    %151 = arith.mulf %138, %150 : vector<17x64xf32>
    %152 = arith.truncf %151 : vector<17x64xf32> to vector<17x64xbf16>
    %cst_42 = arith.constant dense<0.000000e+00> : vector<17x32xf32>
    %153 = tpu.matmul %152, %17, %cst_42 {dimension_numbers = #tpu.dot_dimension_numbers<[1], [0], [0], [1], [0, 0, 1, 1], [], []>} : vector<17x64xbf16>, vector<64x32xbf16>, vector<17x32xf32> -> vector<17x32xf32>
    %154 = arith.addf %112, %153 : vector<17x32xf32>
    %155 = vector.broadcast %13 : vector<1x32xf32> to vector<17x32xf32>
    %156 = arith.addf %154, %155 : vector<17x32xf32>
    %c32 = arith.constant 32 : index
    %c0_43 = arith.constant 0 : index
    %157 = vector.load %arg3[%c32, %c0_43] : memref<48x128xf32, #tpu.memory_space<vmem>>, vector<1x32xf32>
    %c33 = arith.constant 33 : index
    %c0_44 = arith.constant 0 : index
    %158 = vector.load %arg3[%c33, %c0_44] : memref<48x128xf32, #tpu.memory_space<vmem>>, vector<1x32xf32>
    %c34 = arith.constant 34 : index
    %c0_45 = arith.constant 0 : index
    %159 = vector.load %arg3[%c34, %c0_45] : memref<48x128xf32, #tpu.memory_space<vmem>>, vector<1x96xf32>
    %c35 = arith.constant 35 : index
    %c0_46 = arith.constant 0 : index
    %160 = vector.load %arg3[%c35, %c0_46] : memref<48x128xf32, #tpu.memory_space<vmem>>, vector<1x32xf32>
    %c36 = arith.constant 36 : index
    %c0_47 = arith.constant 0 : index
    %161 = vector.load %arg3[%c36, %c0_47] : memref<48x128xf32, #tpu.memory_space<vmem>>, vector<1x32xf32>
    %c37 = arith.constant 37 : index
    %c0_48 = arith.constant 0 : index
    %162 = vector.load %arg3[%c37, %c0_48] : memref<48x128xf32, #tpu.memory_space<vmem>>, vector<1x32xf32>
    %c38 = arith.constant 38 : index
    %c0_49 = arith.constant 0 : index
    %163 = vector.load %arg3[%c38, %c0_49] : memref<48x128xf32, #tpu.memory_space<vmem>>, vector<1x64xf32>
    %c39 = arith.constant 39 : index
    %c0_50 = arith.constant 0 : index
    %164 = vector.load %arg3[%c39, %c0_50] : memref<48x128xf32, #tpu.memory_space<vmem>>, vector<1x32xf32>
    %c80 = arith.constant 80 : index
    %c0_51 = arith.constant 0 : index
    %165 = vector.load %arg2[%c80, %c0_51] : memref<368x128xbf16, #tpu.memory_space<vmem>>, vector<32x96xbf16>
    %c144 = arith.constant 144 : index
    %c0_52 = arith.constant 0 : index
    %166 = vector.load %arg2[%c144, %c0_52] : memref<368x128xbf16, #tpu.memory_space<vmem>>, vector<32x32xbf16>
    %c208 = arith.constant 208 : index
    %c0_53 = arith.constant 0 : index
    %167 = vector.load %arg2[%c208, %c0_53] : memref<368x128xbf16, #tpu.memory_space<vmem>>, vector<32x64xbf16>
    %c304 = arith.constant 304 : index
    %c0_54 = arith.constant 0 : index
    %168 = vector.load %arg2[%c304, %c0_54] : memref<368x128xbf16, #tpu.memory_space<vmem>>, vector<64x32xbf16>
    %cst_55 = arith.constant dense<0.000000e+00> : vector<17xf32>
    %169 = vector.multi_reduction <add>, %156, %cst_55 [1] : vector<17x32xf32> to vector<17xf32>
    %170 = vector.shape_cast %169 : vector<17xf32> to vector<17x1xf32>
    %cst_56 = arith.constant 3.200000e+01 : f32
    %171 = vector.broadcast %cst_56 : f32 to vector<17x1xf32>
    %172 = arith.divf %170, %171 : vector<17x1xf32>
    %173 = vector.broadcast %172 : vector<17x1xf32> to vector<17x32xf32>
    %174 = arith.subf %156, %173 : vector<17x32xf32>
    %175 = arith.mulf %174, %174 : vector<17x32xf32>
    %cst_57 = arith.constant dense<0.000000e+00> : vector<17xf32>
    %176 = vector.multi_reduction <add>, %175, %cst_57 [1] : vector<17x32xf32> to vector<17xf32>
    %177 = vector.shape_cast %176 : vector<17xf32> to vector<17x1xf32>
    %cst_58 = arith.constant 3.200000e+01 : f32
    %178 = vector.broadcast %cst_58 : f32 to vector<17x1xf32>
    %179 = arith.divf %177, %178 : vector<17x1xf32>
    %180 = vector.broadcast %172 : vector<17x1xf32> to vector<17x32xf32>
    %181 = arith.subf %156, %180 : vector<17x32xf32>
    %cst_59 = arith.constant 9.99999997E-7 : f32
    %182 = vector.broadcast %cst_59 : f32 to vector<17x1xf32>
    %183 = arith.addf %179, %182 : vector<17x1xf32>
    %184 = math.rsqrt %183 : vector<17x1xf32>
    %185 = vector.broadcast %184 : vector<17x1xf32> to vector<17x32xf32>
    %186 = arith.mulf %181, %185 : vector<17x32xf32>
    %187 = vector.broadcast %157 : vector<1x32xf32> to vector<17x32xf32>
    %188 = arith.mulf %186, %187 : vector<17x32xf32>
    %189 = vector.broadcast %158 : vector<1x32xf32> to vector<17x32xf32>
    %190 = arith.addf %188, %189 : vector<17x32xf32>
    %191 = arith.truncf %190 : vector<17x32xf32> to vector<17x32xbf16>
    %cst_60 = arith.constant dense<0.000000e+00> : vector<17x96xf32>
    %192 = tpu.matmul %191, %165, %cst_60 {dimension_numbers = #tpu.dot_dimension_numbers<[1], [0], [0], [1], [0, 0, 1, 1], [], []>} : vector<17x32xbf16>, vector<32x96xbf16>, vector<17x96xf32> -> vector<17x96xf32>
    %193 = vector.broadcast %159 : vector<1x96xf32> to vector<17x96xf32>
    %194 = arith.addf %192, %193 : vector<17x96xf32>
    %195 = vector.extract_strided_slice %194 {offsets = [0, 0], sizes = [17, 8], strides = [1, 1]} : vector<17x96xf32> to vector<17x8xf32>
    %196 = vector.extract_strided_slice %194 {offsets = [0, 8], sizes = [17, 8], strides = [1, 1]} : vector<17x96xf32> to vector<17x8xf32>
    %197 = vector.extract_strided_slice %194 {offsets = [0, 16], sizes = [17, 8], strides = [1, 1]} : vector<17x96xf32> to vector<17x8xf32>
    %198 = vector.extract_strided_slice %194 {offsets = [0, 24], sizes = [17, 8], strides = [1, 1]} : vector<17x96xf32> to vector<17x8xf32>
    %199 = vector.shape_cast %195 : vector<17x8xf32> to vector<1x17x8xf32>
    %200 = vector.shape_cast %196 : vector<17x8xf32> to vector<1x17x8xf32>
    %201 = vector.shape_cast %197 : vector<17x8xf32> to vector<1x17x8xf32>
    %202 = vector.shape_cast %198 : vector<17x8xf32> to vector<1x17x8xf32>
    %203 = tpu.concatenate %199, %200, %201, %202 in 0 : vector<1x17x8xf32>, vector<1x17x8xf32>, vector<1x17x8xf32>, vector<1x17x8xf32> -> vector<4x17x8xf32>
    %204 = vector.extract_strided_slice %194 {offsets = [0, 32], sizes = [17, 8], strides = [1, 1]} : vector<17x96xf32> to vector<17x8xf32>
    %205 = vector.extract_strided_slice %194 {offsets = [0, 40], sizes = [17, 8], strides = [1, 1]} : vector<17x96xf32> to vector<17x8xf32>
    %206 = vector.extract_strided_slice %194 {offsets = [0, 48], sizes = [17, 8], strides = [1, 1]} : vector<17x96xf32> to vector<17x8xf32>
    %207 = vector.extract_strided_slice %194 {offsets = [0, 56], sizes = [17, 8], strides = [1, 1]} : vector<17x96xf32> to vector<17x8xf32>
    %208 = vector.shape_cast %204 : vector<17x8xf32> to vector<1x17x8xf32>
    %209 = vector.shape_cast %205 : vector<17x8xf32> to vector<1x17x8xf32>
    %210 = vector.shape_cast %206 : vector<17x8xf32> to vector<1x17x8xf32>
    %211 = vector.shape_cast %207 : vector<17x8xf32> to vector<1x17x8xf32>
    %212 = tpu.concatenate %208, %209, %210, %211 in 0 : vector<1x17x8xf32>, vector<1x17x8xf32>, vector<1x17x8xf32>, vector<1x17x8xf32> -> vector<4x17x8xf32>
    %213 = vector.extract_strided_slice %194 {offsets = [0, 64], sizes = [17, 8], strides = [1, 1]} : vector<17x96xf32> to vector<17x8xf32>
    %214 = vector.extract_strided_slice %194 {offsets = [0, 72], sizes = [17, 8], strides = [1, 1]} : vector<17x96xf32> to vector<17x8xf32>
    %215 = vector.extract_strided_slice %194 {offsets = [0, 80], sizes = [17, 8], strides = [1, 1]} : vector<17x96xf32> to vector<17x8xf32>
    %216 = vector.extract_strided_slice %194 {offsets = [0, 88], sizes = [17, 8], strides = [1, 1]} : vector<17x96xf32> to vector<17x8xf32>
    %217 = vector.shape_cast %213 : vector<17x8xf32> to vector<1x17x8xf32>
    %218 = vector.shape_cast %214 : vector<17x8xf32> to vector<1x17x8xf32>
    %219 = vector.shape_cast %215 : vector<17x8xf32> to vector<1x17x8xf32>
    %220 = vector.shape_cast %216 : vector<17x8xf32> to vector<1x17x8xf32>
    %221 = tpu.concatenate %217, %218, %219, %220 in 0 : vector<1x17x8xf32>, vector<1x17x8xf32>, vector<1x17x8xf32>, vector<1x17x8xf32> -> vector<4x17x8xf32>
    %222 = arith.truncf %203 : vector<4x17x8xf32> to vector<4x17x8xbf16>
    %223 = arith.truncf %212 : vector<4x17x8xf32> to vector<4x17x8xbf16>
    "tpu.trace_start"() <{level = 10 : i32, message = "hqd,hkd->hqk"}> : () -> ()
    %cst_61 = arith.constant dense<0.000000e+00> : vector<4x17x17xf32>
    %224 = tpu.matmul %222, %223, %cst_61 {dimension_numbers = #tpu.dot_dimension_numbers<[2], [2], [1], [1], [0, 0, 0, 1, 1, 1], [0], [0]>} : vector<4x17x8xbf16>, vector<4x17x8xbf16>, vector<4x17x17xf32> -> vector<4x17x17xf32>
    "tpu.trace_stop"() : () -> ()
    %cst_62 = arith.constant dense<0xFF800000> : vector<4x17xf32>
    %225 = vector.multi_reduction <maximumf>, %224, %cst_62 [2] : vector<4x17x17xf32> to vector<4x17xf32>
    %226 = vector.shape_cast %225 : vector<4x17xf32> to vector<4x17x1xf32>
    %227 = vector.broadcast %226 : vector<4x17x1xf32> to vector<4x17x17xf32>
    %228 = arith.subf %224, %227 : vector<4x17x17xf32>
    %229 = math.exp %228 : vector<4x17x17xf32>
    %cst_63 = arith.constant dense<0.000000e+00> : vector<4x17xf32>
    %230 = vector.multi_reduction <add>, %229, %cst_63 [2] : vector<4x17x17xf32> to vector<4x17xf32>
    %231 = vector.shape_cast %230 : vector<4x17xf32> to vector<4x17x1xf32>
    %232 = tpu.reciprocal %231 {approx = true} : vector<4x17x1xf32> -> vector<4x17x1xf32>
    %233 = vector.broadcast %232 : vector<4x17x1xf32> to vector<4x17x17xf32>
    %234 = arith.mulf %229, %233 : vector<4x17x17xf32>
    %235 = arith.truncf %234 : vector<4x17x17xf32> to vector<4x17x17xbf16>
    %236 = arith.truncf %221 : vector<4x17x8xf32> to vector<4x17x8xbf16>
    "tpu.trace_start"() <{level = 10 : i32, message = "hqk,hkd->hqd"}> : () -> ()
    %cst_64 = arith.constant dense<0.000000e+00> : vector<4x17x8xf32>
    %237 = tpu.matmul %235, %236, %cst_64 {dimension_numbers = #tpu.dot_dimension_numbers<[2], [1], [1], [2], [0, 0, 0, 1, 1, 2], [0], [0]>} : vector<4x17x17xbf16>, vector<4x17x8xbf16>, vector<4x17x8xf32> -> vector<4x17x8xf32>
    "tpu.trace_stop"() : () -> ()
    %238 = vector.extract_strided_slice %237 {offsets = [0, 0, 0], sizes = [1, 17, 8], strides = [1, 1, 1]} : vector<4x17x8xf32> to vector<1x17x8xf32>
    %239 = vector.shape_cast %238 : vector<1x17x8xf32> to vector<17x8xf32>
    %240 = vector.extract_strided_slice %166 {offsets = [0, 0], sizes = [8, 32], strides = [1, 1]} : vector<32x32xbf16> to vector<8x32xbf16>
    %241 = arith.truncf %239 : vector<17x8xf32> to vector<17x8xbf16>
    %cst_65 = arith.constant dense<0.000000e+00> : vector<17x32xf32>
    %242 = tpu.matmul %241, %240, %cst_65 {dimension_numbers = #tpu.dot_dimension_numbers<[1], [0], [0], [1], [0, 0, 1, 1], [], []>} : vector<17x8xbf16>, vector<8x32xbf16>, vector<17x32xf32> -> vector<17x32xf32>
    %243 = vector.extract_strided_slice %237 {offsets = [1, 0, 0], sizes = [1, 17, 8], strides = [1, 1, 1]} : vector<4x17x8xf32> to vector<1x17x8xf32>
    %244 = vector.shape_cast %243 : vector<1x17x8xf32> to vector<17x8xf32>
    %245 = vector.extract_strided_slice %166 {offsets = [8, 0], sizes = [8, 32], strides = [1, 1]} : vector<32x32xbf16> to vector<8x32xbf16>
    %246 = arith.truncf %244 : vector<17x8xf32> to vector<17x8xbf16>
    %cst_66 = arith.constant dense<0.000000e+00> : vector<17x32xf32>
    %247 = tpu.matmul %246, %245, %cst_66 {dimension_numbers = #tpu.dot_dimension_numbers<[1], [0], [0], [1], [0, 0, 1, 1], [], []>} : vector<17x8xbf16>, vector<8x32xbf16>, vector<17x32xf32> -> vector<17x32xf32>
    %248 = arith.addf %242, %247 : vector<17x32xf32>
    %249 = vector.extract_strided_slice %237 {offsets = [2, 0, 0], sizes = [1, 17, 8], strides = [1, 1, 1]} : vector<4x17x8xf32> to vector<1x17x8xf32>
    %250 = vector.shape_cast %249 : vector<1x17x8xf32> to vector<17x8xf32>
    %251 = vector.extract_strided_slice %166 {offsets = [16, 0], sizes = [8, 32], strides = [1, 1]} : vector<32x32xbf16> to vector<8x32xbf16>
    %252 = arith.truncf %250 : vector<17x8xf32> to vector<17x8xbf16>
    %cst_67 = arith.constant dense<0.000000e+00> : vector<17x32xf32>
    %253 = tpu.matmul %252, %251, %cst_67 {dimension_numbers = #tpu.dot_dimension_numbers<[1], [0], [0], [1], [0, 0, 1, 1], [], []>} : vector<17x8xbf16>, vector<8x32xbf16>, vector<17x32xf32> -> vector<17x32xf32>
    %254 = arith.addf %248, %253 : vector<17x32xf32>
    %255 = vector.extract_strided_slice %237 {offsets = [3, 0, 0], sizes = [1, 17, 8], strides = [1, 1, 1]} : vector<4x17x8xf32> to vector<1x17x8xf32>
    %256 = vector.shape_cast %255 : vector<1x17x8xf32> to vector<17x8xf32>
    %257 = vector.extract_strided_slice %166 {offsets = [24, 0], sizes = [8, 32], strides = [1, 1]} : vector<32x32xbf16> to vector<8x32xbf16>
    %258 = arith.truncf %256 : vector<17x8xf32> to vector<17x8xbf16>
    %cst_68 = arith.constant dense<0.000000e+00> : vector<17x32xf32>
    %259 = tpu.matmul %258, %257, %cst_68 {dimension_numbers = #tpu.dot_dimension_numbers<[1], [0], [0], [1], [0, 0, 1, 1], [], []>} : vector<17x8xbf16>, vector<8x32xbf16>, vector<17x32xf32> -> vector<17x32xf32>
    %260 = arith.addf %254, %259 : vector<17x32xf32>
    %261 = arith.addf %156, %260 : vector<17x32xf32>
    %262 = vector.broadcast %160 : vector<1x32xf32> to vector<17x32xf32>
    %263 = arith.addf %261, %262 : vector<17x32xf32>
    %cst_69 = arith.constant dense<0.000000e+00> : vector<17xf32>
    %264 = vector.multi_reduction <add>, %263, %cst_69 [1] : vector<17x32xf32> to vector<17xf32>
    %265 = vector.shape_cast %264 : vector<17xf32> to vector<17x1xf32>
    %cst_70 = arith.constant 3.200000e+01 : f32
    %266 = vector.broadcast %cst_70 : f32 to vector<17x1xf32>
    %267 = arith.divf %265, %266 : vector<17x1xf32>
    %268 = vector.broadcast %267 : vector<17x1xf32> to vector<17x32xf32>
    %269 = arith.subf %263, %268 : vector<17x32xf32>
    %270 = arith.mulf %269, %269 : vector<17x32xf32>
    %cst_71 = arith.constant dense<0.000000e+00> : vector<17xf32>
    %271 = vector.multi_reduction <add>, %270, %cst_71 [1] : vector<17x32xf32> to vector<17xf32>
    %272 = vector.shape_cast %271 : vector<17xf32> to vector<17x1xf32>
    %cst_72 = arith.constant 3.200000e+01 : f32
    %273 = vector.broadcast %cst_72 : f32 to vector<17x1xf32>
    %274 = arith.divf %272, %273 : vector<17x1xf32>
    %275 = vector.broadcast %267 : vector<17x1xf32> to vector<17x32xf32>
    %276 = arith.subf %263, %275 : vector<17x32xf32>
    %cst_73 = arith.constant 9.99999997E-7 : f32
    %277 = vector.broadcast %cst_73 : f32 to vector<17x1xf32>
    %278 = arith.addf %274, %277 : vector<17x1xf32>
    %279 = math.rsqrt %278 : vector<17x1xf32>
    %280 = vector.broadcast %279 : vector<17x1xf32> to vector<17x32xf32>
    %281 = arith.mulf %276, %280 : vector<17x32xf32>
    %282 = vector.broadcast %161 : vector<1x32xf32> to vector<17x32xf32>
    %283 = arith.mulf %281, %282 : vector<17x32xf32>
    %284 = vector.broadcast %162 : vector<1x32xf32> to vector<17x32xf32>
    %285 = arith.addf %283, %284 : vector<17x32xf32>
    %286 = arith.truncf %285 : vector<17x32xf32> to vector<17x32xbf16>
    %cst_74 = arith.constant dense<0.000000e+00> : vector<17x64xf32>
    %287 = tpu.matmul %286, %167, %cst_74 {dimension_numbers = #tpu.dot_dimension_numbers<[1], [0], [0], [1], [0, 0, 1, 1], [], []>} : vector<17x32xbf16>, vector<32x64xbf16>, vector<17x64xf32> -> vector<17x64xf32>
    %288 = vector.broadcast %163 : vector<1x64xf32> to vector<17x64xf32>
    %289 = arith.addf %287, %288 : vector<17x64xf32>
    %290 = arith.mulf %289, %289 : vector<17x64xf32>
    %291 = arith.mulf %289, %290 : vector<17x64xf32>
    %cst_75 = arith.constant 4.471500e-02 : f32
    %292 = vector.broadcast %cst_75 : f32 to vector<17x64xf32>
    %293 = arith.mulf %292, %291 : vector<17x64xf32>
    %294 = arith.addf %289, %293 : vector<17x64xf32>
    %cst_76 = arith.constant 0.797884583 : f32
    %295 = vector.broadcast %cst_76 : f32 to vector<17x64xf32>
    %296 = arith.mulf %295, %294 : vector<17x64xf32>
    %297 = math.tanh %296 : vector<17x64xf32>
    %cst_77 = arith.constant 1.000000e+00 : f32
    %298 = vector.broadcast %cst_77 : f32 to vector<17x64xf32>
    %299 = arith.addf %298, %297 : vector<17x64xf32>
    %cst_78 = arith.constant 5.000000e-01 : f32
    %300 = vector.broadcast %cst_78 : f32 to vector<17x64xf32>
    %301 = arith.mulf %300, %299 : vector<17x64xf32>
    %302 = arith.mulf %289, %301 : vector<17x64xf32>
    %303 = arith.truncf %302 : vector<17x64xf32> to vector<17x64xbf16>
    %cst_79 = arith.constant dense<0.000000e+00> : vector<17x32xf32>
    %304 = tpu.matmul %303, %168, %cst_79 {dimension_numbers = #tpu.dot_dimension_numbers<[1], [0], [0], [1], [0, 0, 1, 1], [], []>} : vector<17x64xbf16>, vector<64x32xbf16>, vector<17x32xf32> -> vector<17x32xf32>
    %305 = arith.addf %263, %304 : vector<17x32xf32>
    %306 = vector.broadcast %164 : vector<1x32xf32> to vector<17x32xf32>
    %307 = arith.addf %305, %306 : vector<17x32xf32>
    %c40 = arith.constant 40 : index
    %c0_80 = arith.constant 0 : index
    %308 = vector.load %arg3[%c40, %c0_80] : memref<48x128xf32, #tpu.memory_space<vmem>>, vector<1x32xf32>
    %c41 = arith.constant 41 : index
    %c0_81 = arith.constant 0 : index
    %309 = vector.load %arg3[%c41, %c0_81] : memref<48x128xf32, #tpu.memory_space<vmem>>, vector<1x32xf32>
    %c42 = arith.constant 42 : index
    %c0_82 = arith.constant 0 : index
    %310 = vector.load %arg3[%c42, %c0_82] : memref<48x128xf32, #tpu.memory_space<vmem>>, vector<1x32xf32>
    %c43 = arith.constant 43 : index
    %c0_83 = arith.constant 0 : index
    %311 = vector.load %arg3[%c43, %c0_83] : memref<48x128xf32, #tpu.memory_space<vmem>>, vector<1x1xf32>
    %312 = vector.extract_strided_slice %307 {offsets = [0, 0], sizes = [1, 32], strides = [1, 1]} : vector<17x32xf32> to vector<1x32xf32>
    %cst_84 = arith.constant dense<0.000000e+00> : vector<1xf32>
    %313 = vector.multi_reduction <add>, %312, %cst_84 [1] : vector<1x32xf32> to vector<1xf32>
    %314 = vector.shape_cast %313 : vector<1xf32> to vector<1x1xf32>
    %cst_85 = arith.constant 3.200000e+01 : f32
    %315 = vector.broadcast %cst_85 : f32 to vector<1x1xf32>
    %316 = arith.divf %314, %315 : vector<1x1xf32>
    %317 = vector.broadcast %316 : vector<1x1xf32> to vector<1x32xf32>
    %318 = arith.subf %312, %317 : vector<1x32xf32>
    %319 = arith.mulf %318, %318 : vector<1x32xf32>
    %cst_86 = arith.constant dense<0.000000e+00> : vector<1xf32>
    %320 = vector.multi_reduction <add>, %319, %cst_86 [1] : vector<1x32xf32> to vector<1xf32>
    %321 = vector.shape_cast %320 : vector<1xf32> to vector<1x1xf32>
    %cst_87 = arith.constant 3.200000e+01 : f32
    %322 = vector.broadcast %cst_87 : f32 to vector<1x1xf32>
    %323 = arith.divf %321, %322 : vector<1x1xf32>
    %324 = vector.broadcast %316 : vector<1x1xf32> to vector<1x32xf32>
    %325 = arith.subf %312, %324 : vector<1x32xf32>
    %cst_88 = arith.constant 9.99999997E-7 : f32
    %326 = vector.broadcast %cst_88 : f32 to vector<1x1xf32>
    %327 = arith.addf %323, %326 : vector<1x1xf32>
    %328 = math.rsqrt %327 : vector<1x1xf32>
    %329 = vector.broadcast %328 : vector<1x1xf32> to vector<1x32xf32>
    %330 = arith.mulf %325, %329 : vector<1x32xf32>
    %331 = arith.mulf %330, %308 : vector<1x32xf32>
    %332 = arith.addf %331, %309 : vector<1x32xf32>
    %333 = arith.mulf %332, %310 : vector<1x32xf32>
    %cst_89 = arith.constant dense<0.000000e+00> : vector<1xf32>
    %334 = vector.multi_reduction <add>, %333, %cst_89 [1] : vector<1x32xf32> to vector<1xf32>
    %335 = vector.shape_cast %334 : vector<1xf32> to vector<1x1xf32>
    %336 = arith.addf %335, %311 : vector<1x1xf32>
    %cst_90 = arith.constant 0.000000e+00 : f32
    %337 = vector.broadcast %cst_90 : f32 to vector<1x1xf32>
    %338 = arith.subf %337, %336 : vector<1x1xf32>
    %339 = math.exp %338 : vector<1x1xf32>
    %cst_91 = arith.constant 1.000000e+00 : f32
    %340 = vector.broadcast %cst_91 : f32 to vector<1x1xf32>
    %341 = arith.addf %340, %339 : vector<1x1xf32>
    %cst_92 = arith.constant 1.000000e+00 : f32
    %342 = vector.broadcast %cst_92 : f32 to vector<1x1xf32>
    %343 = arith.divf %342, %341 : vector<1x1xf32>
    %344 = vector.shape_cast %343 : vector<1x1xf32> to vector<1x1x1xf32>
    %345 = vector.shape_cast %344 : vector<1x1x1xf32> to vector<1x1x1xf32>
    %346 = vector.broadcast %345 : vector<1x1x1xf32> to vector<1x1x128xf32>
    %c0_93 = arith.constant 0 : index
    %c0_94 = arith.constant 0 : index
    %c0_95 = arith.constant 0 : index
    %347 = vector.load %arg4[%c0_93, %c0_94, %c0_95] : memref<1x1x128xf32, #tpu.memory_space<vmem>>, vector<1x1x128xf32>
    tpu.vector_store %arg4[%c0_93, %c0_94, %c0_95], %346 {strides = array<i32>} : memref<1x1x128xf32, #tpu.memory_space<vmem>>, vector<1x1x128xf32>,
    return
  }
  func.func @transform_0(%arg0: i32) -> (i32, i32, i32) {
    %c0_i32 = arith.constant 0 : i32
    %c0_i32_0 = arith.constant 0 : i32
    %c0_i32_1 = arith.constant 0 : i32
    return %arg0, %c0_i32, %c0_i32_0 : i32, i32, i32
  }
  func.func @transform_1(%arg0: i32) -> (i32, i32) {
    %c0_i32 = arith.constant 0 : i32
    %c0_i32_0 = arith.constant 0 : i32
    %c0_i32_1 = arith.constant 0 : i32
    return %c0_i32, %c0_i32_0 : i32, i32
  }
  func.func @transform_2(%arg0: i32) -> (i32, i32) {
    %c0_i32 = arith.constant 0 : i32
    %c0_i32_0 = arith.constant 0 : i32
    %c0_i32_1 = arith.constant 0 : i32
    return %c0_i32, %c0_i32_0 : i32, i32
  }
  func.func @transform_3(%arg0: i32) -> (i32, i32, i32) {
    %c0_i32 = arith.constant 0 : i32
    %c0_i32_0 = arith.constant 0 : i32
    %c0_i32_1 = arith.constant 0 : i32
    return %arg0, %c0_i32, %c0_i32_0 : i32, i32, i32
  }
}

</mosaic_0001>

<bundles_post_ra>
// kernel: activated_vit_forward.1
= control target key start
LH: loop header
LB: loop body
LE: loop exit
PB: predicated region body
PF: predicated region fallthrough
CT: control target
= control target key end

     0   :  { %s3757_s12 = smov 0   ;;  %s4457_s0 = inlined_call_operand.vmem [shape: bf16[2,17,48], index: 0, kind: input, shape index: {}]   ;;  %s4458_s1 = inlined_call_operand.vmem [shape: bf16[368,128], index: 1, kind: input, shape index: {}]   ;;  %s4459_s2 = inlined_call_operand.vmem [shape: f32[48,128], index: 2, kind: input, shape index: {}]   ;;  %s4460_s3 = inlined_call_operand.vmem [shape: f32[2,1,128], index: 3, kind: output, shape index: {}]  }
   0x1 LB: > { %s3023_s13 = sadd.s32 4294967295, %s3729_s12   ;;  %p3027_p0 = scmp.ge.s32.totalorder %s3729_s12, 1  ;;  %s3729_s12 = sphi %s3757_s12, %s13_s12  }
   0x2   : > { %p137_p1 = scmp.lt.s32.totalorder %s3729_s12, 3 }
   0x4   : > { %p138_p2 = pnand %p3027_p0, %p137_p1 }
   0x5   : > { %v3564_v0 = vld [vmem:[%s4458_s1] sm:$0xff] (!%p138_p2)   ;;  %p159_p3 = scmp.lt.s32.totalorder (!%p138_p2), %s3023_s13, 1  ;;  %v3565_v1 = vld [vmem:[%s4458_s1 + $0x8] sm:$0xff] (!%p138_p2)   ;;  %vm206_vm0 = vcmask (!%p138_p2), 392192   ;;  %v3566_v2 = vld [vmem:[%s4458_s1 + $0x10] sm:$0xff] (!%p138_p2)   ;;  %vm296_vm1 = vcmask (!%p138_p2), 253952  }
   0x6   : > { %141 = sbr.rel (%p138_p2) target bundleno = 5989 (0x1765), region = 32  ;;  %3251 = vmatprep.subr.bf16.mxu0 (!%p138_p2), %v3564_v0  ;;  %v176_v5 = vld [vmem:[%s4459_s2 + $0x10] sm:$0x1] (!%p138_p2)  ;;  %v174_v6 = vld [vmem:[%s4459_s2] sm:$0xff] (!%p138_p2)  ;;  %v175_v10 = vld [vmem:[%s4459_s2 + $0x8] sm:$0xff] (!%p138_p2)  ;;  %vm289_vm2 = vcmask (!%p138_p2), 261120  }
   0x7   : > { %3252 = vmatpush3.bf16.msra.mxu0 (!%p138_p2), %v3564_v0  ;;  %v3569_v33 = vld [vmem:[%s4458_s1 + $0x18] sm:$0xff] (!%p138_p2)   ;;  %v3570_v34 = vld [vmem:[%s4458_s1 + $0x20] sm:$0xff] (!%p138_p2)   ;;  %s3731_s15 = smov (!%p138_p2), 120   ;;  %vm461_vm3 = vcmask (!%p138_p2), 64512   ;;  %s3732_s16 = smov (!%p138_p2), 112   ;;  %vm727_vm4 = vcmask (!%p138_p2), 131072  }
   0x8   : > { %3253 = vmatprep.subr.bf16.mxu0 (!%p138_p2), %v3565_v1  ;;  %3261 = vmatprep.subr.bf16.mxu1 (!%p138_p2), %v3569_v33  ;;  %v3036_v46 = vld [vmem:[%s4459_s2 + $0x18] ss:$0 sm:$0xff] (!%p138_p2)  ;;  %v3037_v52 = vld [vmem:[%s4459_s2 + $0x19] ss:$0 sm:$0xff] (!%p138_p2)  ;;  %v3038_v60 = vld [vmem:[%s4459_s2 + $0x1a] ss:$0 sm:$0xff] (!%p138_p2) }
   0x9   : > { %3262 = vmatpush3.bf16.msra.mxu1 (!%p138_p2), %v3569_v33  ;;  %s3733_s17 = smov (!%p138_p2), 104   ;;  %s3734_s18 = smov (!%p138_p2), 96   ;;  %vm720_vm5 = vcmask (!%p138_p2), 138240   ;;  %vm873_vm6 = vcmask (!%p138_p2), 1040384   ;;  %vm1123_vm7 = vcmask (!%p138_p2), 1043456   ;;  %vm1544_vm8 = vcmask (!%p138_p2), 523264  }
   0xa   : > { %3263 = vmatprep.subr.bf16.mxu1 (!%p138_p2), %v3570_v34  ;;  %s3735_s19 = smov (!%p138_p2), 64  }
   0xb   : > { %3254 = vmatpush3.bf16.msra.mxu0 (!%p138_p2), %v3565_v1 }
   0xc   : > { %3255 = vmatprep.subr.bf16.mxu0 (!%p138_p2), %v3566_v2 }
   0xd   : > { %s4462_s13 = smov (!%p159_p3, %s3023_s13), 1  ;;  %3264 = vmatpush3.bf16.msra.mxu1 %v3570_v34 }
   0xe   : > { %s3517_s20 = smul.u32 12, %s4462_s13  ;;  %s166_s30 = scalar_lea.vmem %s4460_s3, %s4462_s13 }
   0xf   : > { %3256 = vmatpush3.bf16.msra.mxu0 %v3566_v2 }
  0x10   : > { %s163_s23 = scalar_lea.vmem %s4457_s0, %s3517_s20 }
  0x11   : > { %v3567_v3 = vld [vmem:[%s163_s23] sm:$0xff]   ;;  %v3568_v4 = vld [vmem:[%s163_s23 + $0x8] ss:$0 sps:$4 sm:$0x11]  }
  0x12   : > { %3257 = vmatprep.mubr.msk.bf16.mxu0 %vm206_vm0, %v3567_v3 }
  0x13   : > { %3258 = vmatmul.mubr.msk.bf16.vlgmr.msra.gmra.mrb[0].mxu0 %vm206_vm0, %v3568_v4 }
  0xe6   : > { %v3259_v7 = vpop.f32.mrb[0].mxu0 }
  0xe7   : > { %v3786_v8 = vadd.f32 %v3259_v7, %v176_v5  ;;  %v247_v9 = vpop.f32.mrb[1].mxu0 }
  0xe8   : > { %v3791_v11 = vadd.f32 %v247_v9, %v174_v6  ;;  %v3260_v12 = vpop.f32.mrb[2].mxu0 }
  0xe9   : > { %v250_v13 = vpop.f32.mrb[3].mxu0  ;;  %v297_v14 = vsel %vm296_vm1, %v3786_v8, 0.0 }
  0xea   : > { %v3795_v15 = vadd.f32 %v250_v13, %v175_v10  ;;  %298 = vadd.xlane.f32.xlu1 %v297_v14  ;;  %v290_v16 = vsel %vm289_vm2, %v3791_v11, 0.0 }
  0xeb   : > { %291 = vadd.xlane.f32.xlu0 %v290_v16 }
  0xec   : > { %v293_v17 = vsel %vm289_vm2, %v3795_v15, 0.0 }
  0xef   : > { %294 = vadd.xlane.f32.xlu0 %v293_v17 }
 0x177   : > { %v299_v18 = vpop.xlane.xlu1 %298 }
 0x178   : > { %v303_v19 = vmul.f32 0.03125, %v299_v18  ;;  %v292_v20 = vpop.xlane.xlu0 %291 }
 0x179   : > { %v301_v21 = vmul.f32 0.03125, %v292_v20 }
 0x17a   : > { %v306_v22 = vsub.f32 %v3786_v8, %v303_v19 }
 0x17b   : > { %v304_v23 = vsub.f32 %v3791_v11, %v301_v21 }
 0x17c   : > { %v295_v24 = vpop.xlane.xlu0 %294  ;;  %v309_v29 = vmul.f32 %v306_v22, %v306_v22 }
 0x17d   : > { %v302_v25 = vmul.f32 0.03125, %v295_v24  ;;  %v307_v26 = vmul.f32 %v304_v23, %v304_v23 }
 0x17e   : > { %v316_v31 = vsel %vm296_vm1, %v309_v29, 0.0 }
 0x17f   : > { %v305_v27 = vsub.f32 %v3795_v15, %v302_v25  ;;  %v310_v28 = vsel %vm289_vm2, %v307_v26, 0.0 }
 0x180   : > { %311 = vadd.xlane.f32.xlu1 %v310_v28 }
 0x181   : > { %v308_v30 = vmul.f32 %v305_v27, %v305_v27 }
 0x183   : > { %v313_v32 = vsel %vm289_vm2, %v308_v30, 0.0 }
 0x184   : > { %317 = vadd.xlane.f32.xlu1 %v316_v31  ;;  %314 = vadd.xlane.f32.xlu0 %v313_v32 }
 0x20d   : > { %v312_v35 = vpop.xlane.xlu1 %311 }
 0x20e   : > { %v319_v36 = vmul.f32 0.03125, %v312_v35 }
 0x210   : > { %v322_v37 = vadd.f32 1e-06, %v319_v36 }
 0x211   : > { %v318_v38 = vpop.xlane.xlu1 %317  ;;  %v315_v39 = vpop.xlane.xlu0 %314 }
 0x212   : > { %3585 = vrsqrt.f32 %v322_v37  ;;  %v321_v40 = vmul.f32 0.03125, %v318_v38  ;;  %v320_v41 = vmul.f32 0.03125, %v315_v39 }
 0x214   : > { %v324_v42 = vadd.f32 1e-06, %v321_v40  ;;  %v323_v43 = vadd.f32 1e-06, %v320_v41 }
 0x216   : > { %3587 = vrsqrt.f32 %v324_v42 }
 0x217   : > { %3589 = vrsqrt.f32 %v323_v43 }
 0x21c   : > { %v3586_v44 = vpop.eup %3585 }
 0x21d   : > { %v328_v45 = vmul.f32 %v3586_v44, %v304_v23 }
 0x21f   : > { %v335_v51 = vmul.f32 %v3036_v46, %v328_v45 }
 0x220   : > { %v3588_v47 = vpop.eup %3587 }
 0x221   : > { %v3590_v48 = vpop.eup %3589  ;;  %v330_v49 = vmul.f32 %v3588_v47, %v306_v22  ;;  %v342_v56 = vadd.f32 %v3037_v52, %v335_v51 }
 0x222   : > { %v329_v50 = vmul.f32 %v3590_v48, %v305_v27 }
 0x223   : > { %v337_v53 = vmul.f32 %v3036_v46, %v330_v49 }
 0x224   : > { %v336_v54 = vmul.f32 %v3036_v46, %v329_v50 }
 0x225   : > { %v344_v55 = vadd.f32 %v3037_v52, %v337_v53 }
 0x226   : > { %v343_v57 = vadd.f32 %v3037_v52, %v336_v54 }
 0x227   : > { %v346_v58 = vpack.c.bf16 %v344_v55, %v344_v55 }
 0x228   : > { %v345_v59 = vpack.c.bf16 %v343_v57, %v342_v56 }
 0x22a   : > { %3265 = vmatprep.mubr.msk.bf16.mxu1 %vm289_vm2, %v345_v59 }
 0x22b   : > { %3266 = vmatmul.mubr.msk.bf16.vlgmr.msra.gmra.mrb[0].mxu1 %vm289_vm2, %v346_v58 }
 0x2fe   : > { %v3267_v61 = vpop.f32.mrb[0].mxu1 }
 0x2ff   : > { %v412_v62 = vadd.f32 %v3267_v61, %v3038_v60  ;;  %v403_v63 = vpop.f32.mrb[1].mxu1 }
 0x300   : > { %v3268_v0 = vpop.f32.mrb[2].mxu1  ;;  %v404_v2 = vadd.f32 %v3038_v60, %v403_v63 }
 0x301   : > { %424 = vrot.lane.b32.xlu1 %v412_v62, %s3731_s15  ;;  %v406_v1 = vpop.f32.mrb[3].mxu1  ;;  %v3836_v6 = vpack.c.bf16 %v412_v62, %v412_v62 }
 0x302   : > { %v407_v3 = vadd.f32 %v3038_v60, %v406_v1 }
 0x304   : > { %v3537_v4 = vpack.i.bf16 %v407_v3, %v404_v2  ;;  %v3825_v5 = vpack.c.bf16 %v407_v3, %v404_v2 }
 0x306   : > { %3538 = vrot.lane.b32.xlu1 %v3537_v4, %s3732_s16  ;;  %3533 = vrot.lane.b32.xlu0 %v3537_v4, %s3731_s15 }
 0x307   : > { %3273 = vmatprep.mubr.msk.bf16.mxu1 %vm461_vm3, %v3825_v5 }
 0x30a   : > { %3543 = vrot.lane.b32.xlu1 %v3537_v4, %s3733_s17  ;;  %433 = vrot.lane.b32.xlu0 %v412_v62, %s3732_s16 }
 0x30e   : > { %442 = vrot.lane.b32.xlu1 %v412_v62, %s3733_s17  ;;  %457 = vrot.lane.b32.xlu0 %v3825_v5, %s3734_s18 }
 0x312   : > { %459 = vrot.lane.b32.xlu0 %v3836_v6, %s3734_s18 }
 0x373   : > { %v425_v7 = vpop.permute.xlu1 %424 }
 0x374   : > { %v3850_v21 = vpack.c.bf16 %v425_v7, %v425_v7 }
 0x378   : > { %v3539_v9 = vpop.permute.xlu1 %3538  ;;  %v3534_v10 = vpop.permute.xlu0 %3533 }
 0x379   : > { %v3541_v12 = vunpack.i.h.bf16 %v3539_v9  ;;  %v3540_v13 = vunpack.i.l.bf16 %v3539_v9  ;;  %v3536_v14 = vunpack.i.h.bf16 %v3534_v10  ;;  %v3535_v16 = vunpack.i.l.bf16 %v3534_v10 }
 0x37b   : > { %v3840_v17 = vpack.c.bf16 %v3536_v14, %v3535_v16  ;;  %v3842_v18 = vpack.c.bf16 %v3541_v12, %v3540_v13  ;;  %v3736_v12 = vmov 0  }
 0x37c   : > { %v3544_v19 = vpop.permute.xlu1 %3543  ;;  %v434_v20 = vpop.permute.xlu0 %433  ;;  %3562 = vset.pattern.permute.xlu1 %v3736_v12  ;;  %3563 = vset.pattern.permute.xlu0 %v3736_v12 }
 0x37d   : > { %524 = vrot.lane.b32.xlu1 %v3840_v17, %s3734_s18  ;;  %3281 = vmatprep.mubr.msk.bf16.mxu0 %vm461_vm3, %v3840_v17  ;;  %v3546_v22 = vunpack.i.h.bf16 %v3544_v19  ;;  %v3545_v23 = vunpack.i.l.bf16 %v3544_v19  ;;  %v3852_v24 = vpack.c.bf16 %v434_v20, %v434_v20 }
 0x37e   : > { %590 = vrot.lane.b32.xlu0 %v3842_v18, %s3734_s18 }
 0x37f   : > { %v3860_v27 = vpack.c.bf16 %v3546_v22, %v3545_v23 }
 0x380   : > { %v458_v25 = vpop.permute.xlu0 %457  ;;  %v443_v28 = vpop.permute.xlu1 %442 }
 0x381   : > { %526 = vrot.lane.b32.xlu1 %v3850_v21, %s3734_s18  ;;  %3493 = vmatprep.subr.msk.bf16.mxu1 %vm461_vm3, %v458_v25  ;;  %v469_v26 = vsel %vm461_vm3, %v458_v25, 0  ;;  %v3865_v30 = vpack.c.bf16 %v443_v28, %v443_v28 }
 0x382   : > { %592 = vrot.lane.b32.xlu0 %v3852_v24, %s3734_s18  ;;  %3270 = vmatpush3.bf16.xpose.msra.mxu1 %v469_v26 }
 0x384   : > { %v460_v29 = vpop.permute.xlu0 %459 }
 0x385   : > { %656 = vrot.lane.b32.xlu1 %v3860_v27, %s3734_s18  ;;  %3494 = vmatprep.subr.msk.bf16.mxu1 %vm461_vm3, %v460_v29  ;;  %v472_v31 = vsel %vm461_vm3, %v460_v29, 0 }
 0x389   : > { %658 = vrot.lane.b32.xlu1 %v3865_v30, %s3734_s18 }
 0x38a   : > { %3272 = vmatpush3.bf16.xpose.msra.mxu1 %v472_v31 }
 0x391   : > { %3274 = vmatmul.mubr.msk.bf16.vlgmr.msra.gmra.mrb[4].mxu1 %vm461_vm3, %v3836_v6 }
 0x392   : > { %3289 = vmatprep.mubr.msk.bf16.mxu1 %vm461_vm3, %v3842_v18 }
 0x3ef   : > { %v525_v32 = vpop.permute.xlu1 %524 }
 0x3f0   : > { %v591_v33 = vpop.permute.xlu0 %590  ;;  %3495 = vmatprep.subr.msk.bf16.mxu0 %vm461_vm3, %v525_v32  ;;  %v535_v34 = vsel %vm461_vm3, %v525_v32, 0 }
 0x3f1   : > { %3497 = vmatprep.subr.msk.bf16.mxu1 %vm461_vm3, %v591_v33  ;;  %3278 = vmatpush3.bf16.xpose.msra.mxu0 %v535_v34  ;;  %v601_v35 = vsel %vm461_vm3, %v591_v33, 0 }
 0x3f2   : > { %3286 = vmatpush3.bf16.xpose.msra.mxu1 %v601_v35 }
 0x3f3   : > { %v527_v36 = vpop.permute.xlu1 %526 }
 0x3f4   : > { %v593_v37 = vpop.permute.xlu0 %592  ;;  %3496 = vmatprep.subr.msk.bf16.mxu0 %vm461_vm3, %v527_v36  ;;  %v538_v38 = vsel %vm461_vm3, %v527_v36, 0 }
 0x3f5   : > { %3498 = vmatprep.subr.msk.bf16.mxu1 %vm461_vm3, %v593_v37  ;;  %v604_v40 = vsel %vm461_vm3, %v593_v37, 0 }
 0x3f7   : > { %v657_v39 = vpop.permute.xlu1 %656 }
 0x3f8   : > { %v667_v41 = vsel %vm461_vm3, %v657_v39, 0 }
 0x3f9   : > { %3280 = vmatpush3.bf16.xpose.msra.mxu0 %v538_v38 }
 0x3fa   : > { %3288 = vmatpush3.bf16.xpose.msra.mxu1 %v604_v40  ;;  %3499 = vmatprep.subr.msk.bf16.mxu0 %vm461_vm3, %v657_v39 }
 0x3fb   : > { %v659_v42 = vpop.permute.xlu1 %658 }
 0x3fc   : > { %v670_v43 = vsel %vm461_vm3, %v659_v42, 0 }
 0x400   : > { %3282 = vmatmul.mubr.msk.bf16.vlgmr.msra.gmra.mrb[4].mxu0 %vm461_vm3, %v3850_v21 }
 0x401   : > { %3290 = vmatmul.mubr.msk.bf16.vlgmr.msra.gmra.mrb[8].mxu1 %vm461_vm3, %v3852_v24  ;;  %3294 = vmatpush3.bf16.xpose.msra.mxu0 %v667_v41 }
 0x402   : > { %3297 = vmatprep.mubr.msk.bf16.mxu0 %vm461_vm3, %v3860_v27  ;;  %3500 = vmatprep.subr.msk.bf16.mxu0 %vm461_vm3, %v659_v42 }
 0x409   : > { %3296 = vmatpush3.bf16.xpose.msra.mxu0 %v670_v43 }
 0x410   : > { %3298 = vmatmul.mubr.msk.bf16.vlgmr.msra.gmra.mrb[8].mxu0 %vm461_vm3, %v3865_v30 }
 0x464   : > { %v3275_v44 = vpop.f32.mrb[4].mxu1 }
 0x465   : > { %v508_v45 = vpop.f32.mrb[5].mxu1  ;;  %v728_v46 = vsel %vm727_vm4, %v3275_v44, -inf }
 0x466   : > { %729 = vmax.xlane.f32.xlu0 %v728_v46  ;;  %v3276_v47 = vpop.f32.mrb[6].mxu1  ;;  %v721_v50 = vsel %vm720_vm5, %v508_v45, -inf }
 0x467   : > { %v511_v48 = vpop.f32.mrb[7].mxu1 }
 0x468   : > { %v724_v49 = vsel %vm720_vm5, %v511_v48, -inf }
 0x469   : > { %725 = vmax.xlane.f32.xlu1 %v724_v49 }
 0x46a   : > { %722 = vmax.xlane.f32.xlu0 %v721_v50 }
 0x4d3   : > { %v3897_v51 = vpop.f32.mrb[4].mxu0 }
 0x4d4   : > { %v3899_v52 = vpop.f32.mrb[8].mxu1  ;;  %v3901_v53 = vpop.f32.mrb[5].mxu0  ;;  %v737_v54 = vsel %vm727_vm4, %v3897_v51, -inf }
 0x4d5   : > { %v3905_v55 = vpop.f32.mrb[9].mxu1  ;;  %v3284_v56 = vpop.f32.mrb[6].mxu0  ;;  %738 = vmax.xlane.f32.xlu1 %v737_v54  ;;  %v731_v57 = vsel %vm720_vm5, %v3901_v53, -inf  ;;  %v746_v0 = vsel %vm727_vm4, %v3899_v52, -inf }
 0x4d6   : > { %v3292_v58 = vpop.f32.mrb[10].mxu1  ;;  %v3909_v59 = vpop.f32.mrb[7].mxu0  ;;  %732 = vmax.xlane.f32.xlu0 %v731_v57  ;;  %v740_v63 = vsel %vm720_vm5, %v3905_v55, -inf }
 0x4d7   : > { %v643_v60 = vpop.f32.mrb[11].mxu1  ;;  %v734_v62 = vsel %vm720_vm5, %v3909_v59, -inf }
 0x4d8   : > { %v743_v61 = vsel %vm720_vm5, %v643_v60, -inf }
 0x4d9   : > { %744 = vmax.xlane.f32.xlu1 %v743_v61 }
 0x4da   : > { %735 = vmax.xlane.f32.xlu0 %v734_v62 }
 0x4de   : > { %741 = vmax.xlane.f32.xlu0 %v740_v63 }
 0x4e2   : > { %747 = vmax.xlane.f32.xlu0 %v746_v0 }
 0x4e3   : > { %v3918_v1 = vpop.f32.mrb[8].mxu0 }
 0x4e4   : > { %v3920_v2 = vpop.f32.mrb[9].mxu0  ;;  %v755_v10 = vsel %vm727_vm4, %v3918_v1, -inf }
 0x4e5   : > { %v3300_v3 = vpop.f32.mrb[10].mxu0  ;;  %v749_v4 = vsel %vm720_vm5, %v3920_v2, -inf }
 0x4e6   : > { %v3924_v7 = vpop.f32.mrb[11].mxu0  ;;  %750 = vmax.xlane.f32.xlu1 %v749_v4 }
 0x4e7   : > { %v752_v9 = vsel %vm720_vm5, %v3924_v7, -inf }
 0x4e8   : > { %753 = vmax.xlane.f32.xlu0 %v752_v9 }
 0x4ea   : > { %756 = vmax.xlane.f32.xlu1 %v755_v10 }
 0x4f3   : > { %v730_v13 = vpop.xlane.xlu0 %729 }
 0x4f6   : > { %v726_v20 = vpop.xlane.xlu1 %725 }
 0x4f7   : > { %v723_v14 = vpop.xlane.xlu0 %722  ;;  %v759_v22 = vsub.f32 %v511_v48, %v726_v20 }
 0x4f8   : > { %v758_v19 = vsub.f32 %v508_v45, %v723_v14 }
 0x4fb   : > { %864 = vrot.lane.b32.xlu1 %v3836_v6, %s3735_s19  ;;  %v760_v6 = vsub.f32 %v3275_v44, %v730_v13 }
 0x4fd   : > { %v774_v16 = vmul.f32 1.442695, %v760_v6 }
 0x4fe   : > { %862 = vrot.lane.b32.xlu0 %v3825_v5, %s3735_s19  ;;  %v770_v5 = vmul.f32 1.442695, %v758_v19 }
 0x4ff   : > { %927 = vrot.lane.b32.xlu1 %v3840_v17, %s3735_s19  ;;  %3591 = vpow2.f32 %v774_v16  ;;  %v772_v17 = vmul.f32 1.442695, %v759_v22 }
 0x500   : > { %3593 = vpow2.f32 %v770_v5 }
 0x501   : > { %3595 = vpow2.f32 %v772_v17 }
 0x502   : > { %989 = vrot.lane.b32.xlu0 %v3842_v18, %s3735_s19 }
 0x503   : > { %929 = vrot.lane.b32.xlu1 %v3850_v21, %s3735_s19 }
 0x507   : > { %991 = vrot.lane.b32.xlu1 %v3852_v24, %s3735_s19 }
 0x509   : > { %v3944_v23 = vpop.eup %3591 }
 0x50a   : > { %v800_v18 = vsel %vm727_vm4, %v3944_v23, 0.0  ;;  %v3948_v21 = vpop.eup %3593 }
 0x50b   : > { %v794_v24 = vsel %vm720_vm5, %v3948_v21, 0.0  ;;  %v3952_v25 = vpop.eup %3595 }
 0x50c   : > { %v797_v26 = vsel %vm720_vm5, %v3952_v25, 0.0 }
 0x521   : > { %801 = vadd.xlane.f32.xlu0 %v800_v18 }
 0x525   : > { %795 = vadd.xlane.f32.xlu0 %v794_v24 }
 0x52b   : > { %798 = vadd.xlane.f32.xlu1 %v797_v26 }
 0x562   : > { %v739_v28 = vpop.xlane.xlu1 %738 }
 0x563   : > { %v763_v29 = vsub.f32 %v3897_v51, %v739_v28  ;;  %v733_v31 = vpop.xlane.xlu0 %732 }
 0x564   : > { %v761_v32 = vsub.f32 %v3901_v53, %v733_v31 }
 0x565   : > { %v780_v33 = vmul.f32 1.442695, %v763_v29 }
 0x566   : > { %v776_v34 = vmul.f32 1.442695, %v761_v32  ;;  %v745_v35 = vpop.xlane.xlu1 %744 }
 0x567   : > { %3597 = vpow2.f32 %v780_v33  ;;  %v765_v36 = vsub.f32 %v643_v60, %v745_v35  ;;  %v736_v37 = vpop.xlane.xlu0 %735  ;;  %v3975_v60 = vsel %vm873_vm6, 65535, %v3736_v12 }
 0x568   : > { %3599 = vpow2.f32 %v776_v34  ;;  %v762_v44 = vsub.f32 %v3909_v59, %v736_v37 }
 0x569   : > { %v784_v38 = vmul.f32 1.442695, %v765_v36 }
 0x56a   : > { %v778_v53 = vmul.f32 1.442695, %v762_v44 }
 0x56b   : > { %v742_v39 = vpop.xlane.xlu0 %741  ;;  %3601 = vpow2.f32 %v784_v38 }
 0x56c   : > { %v764_v40 = vsub.f32 %v3905_v55, %v742_v39 }
 0x56e   : > { %v782_v45 = vmul.f32 1.442695, %v764_v40 }
 0x56f   : > { %v748_v41 = vpop.xlane.xlu0 %747 }
 0x570   : > { %v766_v42 = vsub.f32 %v3899_v52, %v748_v41 }
 0x571   : > { %v3960_v43 = vpop.eup %3597 }
 0x572   : > { %v786_v46 = vmul.f32 1.442695, %v766_v42  ;;  %v809_v47 = vsel %vm727_vm4, %v3960_v43, 0.0  ;;  %v3965_v48 = vpop.eup %3599 }
 0x573   : > { %810 = vadd.xlane.f32.xlu1 %v809_v47  ;;  %v751_v49 = vpop.xlane.xlu1 %750  ;;  %v803_v54 = vsel %vm720_vm5, %v3965_v48, 0.0 }
 0x574   : > { %3603 = vpow2.f32 %v786_v46  ;;  %v767_v50 = vsub.f32 %v3920_v2, %v751_v49 }
 0x575   : > { %v754_v51 = vpop.xlane.xlu0 %753  ;;  %3605 = vpow2.f32 %v782_v45  ;;  %v3971_v55 = vpop.eup %3601 }
 0x576   : > { %v768_v52 = vsub.f32 %v3924_v7, %v754_v51  ;;  %v788_v58 = vmul.f32 1.442695, %v767_v50  ;;  %3607 = vpow2.f32 %v778_v53  ;;  %v815_v63 = vsel %vm720_vm5, %v3971_v55, 0.0 }
 0x577   : > { %804 = vadd.xlane.f32.xlu1 %v803_v54  ;;  %v757_v56 = vpop.xlane.xlu1 %756 }
 0x578   : > { %v769_v57 = vsub.f32 %v3918_v1, %v757_v56  ;;  %v790_v61 = vmul.f32 1.442695, %v768_v52 }
 0x579   : > { %v863_v59 = vpop.permute.xlu0 %862 }
 0x57a   : > { %v792_v62 = vmul.f32 1.442695, %v769_v57  ;;  %3301 = vmatprep.subr.bf16.mxu1 %v863_v59  ;;  %v273_v57 = vld [vmem:[%s4458_s1 + $0x38] sm:$0xf] }
 0x57b   : > { %3302 = vmatpush3.bf16.msra.mxu1 %v863_v59  ;;  %816 = vadd.xlane.f32.xlu1 %v815_v63  ;;  %v865_v0 = vpop.permute.xlu1 %864 }
 0x57c   : > { %3609 = vpow2.f32 %v792_v62  ;;  %v877_v2 = vand.u32 %v3975_v60, %v865_v0 }
 0x57d   : > { %3611 = vpow2.f32 %v788_v58  ;;  %v4008_v5 = vpop.permute.xlu0 %989 }
 0x57e   : > { %v3980_v1 = vpop.eup %3603  ;;  %3613 = vpow2.f32 %v790_v61  ;;  %3303 = vmatprep.subr.bf16.mxu1 %v877_v2 }
 0x57f   : > { %3304 = vmatpush3.bf16.msra.mxu1 %v877_v2  ;;  %v928_v3 = vpop.permute.xlu1 %927  ;;  %v818_v4 = vsel %vm727_vm4, %v3980_v1, 0.0  ;;  %v3984_v7 = vpop.eup %3605 }
 0x580   : > { %819 = vadd.xlane.f32.xlu0 %v818_v4  ;;  %3309 = vmatprep.subr.bf16.mxu1 %v928_v3  ;;  %v812_v9 = vsel %vm720_vm5, %v3984_v7, 0.0  ;;  %v3988_v10 = vpop.eup %3607 }
 0x581   : > { %v806_v6 = vsel %vm720_vm5, %v3988_v10, 0.0 }
 0x583   : > { %v930_v22 = vpop.permute.xlu1 %929 }
 0x584   : > { %813 = vadd.xlane.f32.xlu0 %v812_v9  ;;  %v939_v35 = vand.u32 %v930_v22, %v3975_v60 }
 0x586   : > { %v3990_v12 = vpop.eup %3609 }
 0x587   : > { %v3992_v13 = vpop.eup %3611  ;;  %v827_v14 = vsel %vm727_vm4, %v3990_v12, 0.0  ;;  %v4010_v18 = vpop.permute.xlu1 %991 }
 0x588   : > { %v3998_v16 = vpop.eup %3613  ;;  %807 = vadd.xlane.f32.xlu0 %v806_v6  ;;  %828 = vadd.xlane.f32.xlu1 %v827_v14  ;;  %v821_v20 = vsel %vm720_vm5, %v3992_v13, 0.0  ;;  %v1001_v4 = vand.u32 %v4010_v18, %v3975_v60  ;;  %v274_v6 = vld [vmem:[%s4458_s1 + $0x3c] sm:$0xf]  ;;  %v275_v14 = vld [vmem:[%s4458_s1 + $0x40] sm:$0xf] }
 0x589   : > { %v824_v19 = vsel %vm720_vm5, %v3998_v16, 0.0 }
 0x58c   : > { %825 = vadd.xlane.f32.xlu0 %v824_v19  ;;  %822 = vadd.xlane.f32.xlu1 %v821_v20 }
 0x59d   : > { %1053 = vrot.lane.b32.xlu1 %v3865_v30, %s3735_s19 }
 0x5a2   : > { %1051 = vrot.lane.b32.xlu0 %v3860_v27, %s3735_s19 }
 0x5ae   : > { %v802_v17 = vpop.xlane.xlu0 %801 }
 0x5af   : > { %3615 = vrcp.f32 %v802_v17 }
 0x5b2   : > { %v796_v24 = vpop.xlane.xlu0 %795 }
 0x5b3   : > { %3617 = vrcp.f32 %v796_v24 }
 0x5b8   : > { %v799_v26 = vpop.xlane.xlu1 %798 }
 0x5b9   : > { %3619 = vrcp.f32 %v799_v26  ;;  %v3616_v28 = vpop.eup %3615 }
 0x5ba   : > { %v844_v32 = vmul.f32 %v3616_v28, %v3944_v23 }
 0x5bc   : > { %v855_v34 = vpack.c.bf16 %v844_v32, %v844_v32 }
 0x5bd   : > { %v3618_v29 = vpop.eup %3617 }
 0x5be   : > { %v842_v30 = vmul.f32 %v3618_v29, %v3948_v21 }
 0x5c3   : > { %v3620_v31 = vpop.eup %3619 }
 0x5c4   : > { %v843_v27 = vmul.f32 %v3620_v31, %v3952_v25 }
 0x5c6   : > { %v854_v33 = vpack.c.bf16 %v843_v27, %v842_v30 }
 0x5c8   : > { %3305 = vmatprep.mubr.msk.bf16.mxu1 %vm720_vm5, %v854_v33  ;;  %v1241_v33 = vsel %vm1123_vm7, %v275_v14, 0 }
 0x5c9   : > { %3306 = vmatmul.mubr.msk.bf16.vlgmr.msra.gmra.mrb[12].mxu1 %vm720_vm5, %v855_v34 }
 0x5ca   : > { %3310 = vmatpush3.bf16.msra.mxu1 %v928_v3 }
 0x5cb   : > { %3311 = vmatprep.subr.bf16.mxu1 %v939_v35 }
 0x5ce   : > { %3312 = vmatpush3.bf16.msra.mxu1 %v939_v35 }
 0x5cf   : > { %3317 = vmatprep.subr.bf16.mxu1 %v4008_v5 }
 0x600   : > { %v811_v36 = vpop.xlane.xlu1 %810 }
 0x601   : > { %3621 = vrcp.f32 %v811_v36 }
 0x604   : > { %v805_v37 = vpop.xlane.xlu1 %804 }
 0x605   : > { %3623 = vrcp.f32 %v805_v37 }
 0x608   : > { %v817_v38 = vpop.xlane.xlu1 %816 }
 0x60b   : > { %v3622_v42 = vpop.eup %3621 }
 0x60c   : > { %v847_v53 = vmul.f32 %v3622_v42, %v3960_v43 }
 0x60d   : > { %v820_v23 = vpop.xlane.xlu0 %819 }
 0x60e   : > { %v857_v43 = vpack.c.bf16 %v847_v53, %v847_v53 }
 0x60f   : > { %v3624_v44 = vpop.eup %3623 }
 0x610   : > { %v845_v52 = vmul.f32 %v3624_v44, %v3965_v48 }
 0x611   : > { %v814_v21 = vpop.xlane.xlu0 %813 }
 0x612   : > { %3625 = vrcp.f32 %v814_v21 }
 0x613   : > { %3627 = vrcp.f32 %v817_v38 }
 0x615   : > { %v808_v25 = vpop.xlane.xlu0 %807  ;;  %v829_v39 = vpop.xlane.xlu1 %828 }
 0x616   : > { %3629 = vrcp.f32 %v808_v25 }
 0x617   : > { %3631 = vrcp.f32 %v829_v39 }
 0x618   : > { %3633 = vrcp.f32 %v820_v23 }
 0x619   : > { %v826_v40 = vpop.xlane.xlu0 %825  ;;  %v823_v41 = vpop.xlane.xlu1 %822 }
 0x61a   : > { %3635 = vrcp.f32 %v826_v40 }
 0x61b   : > { %3637 = vrcp.f32 %v823_v41 }
 0x61c   : > { %v3626_v47 = vpop.eup %3625 }
 0x61d   : > { %v1052_v45 = vpop.permute.xlu0 %1051  ;;  %v1054_v46 = vpop.permute.xlu1 %1053  ;;  %v848_v56 = vmul.f32 %v3626_v47, %v3984_v7 }
 0x61e   : > { %v1063_v49 = vand.u32 %v1054_v46, %v3975_v60  ;;  %3325 = vmatprep.subr.bf16.mxu0 %v1052_v45  ;;  %v3628_v50 = vpop.eup %3627 }
 0x61f   : > { %3326 = vmatpush3.bf16.msra.mxu0 %v1052_v45  ;;  %v849_v62 = vmul.f32 %v3628_v50, %v3971_v55 }
 0x620   : > { %v3630_v51 = vpop.eup %3629  ;;  %3327 = vmatprep.subr.bf16.mxu0 %v1063_v49 }
 0x621   : > { %v846_v54 = vmul.f32 %v3630_v51, %v3988_v10  ;;  %v3632_v58 = vpop.eup %3631  ;;  %v858_v2 = vpack.c.bf16 %v849_v62, %v848_v56 }
 0x622   : > { %v3634_v59 = vpop.eup %3633  ;;  %v853_v0 = vmul.f32 %v3632_v58, %v3990_v12  ;;  %v1182_v12 = vsel %vm1123_vm7, %v273_v57, 0 }
 0x623   : > { %3328 = vmatpush3.bf16.msra.mxu0 %v1063_v49  ;;  %v856_v61 = vpack.c.bf16 %v846_v54, %v845_v52  ;;  %v850_v55 = vmul.f32 %v3634_v59, %v3980_v1  ;;  %v1125_v1 = vsel %vm1123_vm7, %v274_v6, 0 }
 0x624   : > { %v3636_v63 = vpop.eup %3635  ;;  %3502 = vmatprep.subr.msk.bf16.mxu0 %vm1123_vm7, %v273_v57  ;;  %v861_v10 = vpack.c.bf16 %v853_v0, %v853_v0 }
 0x625   : > { %v3638_v48 = vpop.eup %3637  ;;  %3313 = vmatprep.mubr.msk.bf16.mxu1 %vm720_vm5, %v856_v61  ;;  %v852_v3 = vmul.f32 %v3636_v63, %v3998_v16  ;;  %v276_v16 = vld [vmem:[%s4458_s1 + $0x44] sm:$0xf] }
 0x626   : > { %3314 = vmatmul.mubr.msk.bf16.vlgmr.msra.gmra.mrb[16].mxu1 %vm720_vm5, %v857_v43  ;;  %v851_v7 = vmul.f32 %v3638_v48, %v3992_v13  ;;  %v859_v13 = vpack.c.bf16 %v850_v55, %v850_v55  ;;  %v1303_v24 = vsel %vm1123_vm7, %v276_v16, 0 }
 0x627   : > { %3318 = vmatpush3.bf16.msra.mxu1 %v4008_v5  ;;  %3321 = vmatprep.mubr.msk.bf16.mxu1 %vm720_vm5, %v858_v2 }
 0x628   : > { %3319 = vmatprep.subr.bf16.mxu1 %v1001_v4  ;;  %v860_v9 = vpack.c.bf16 %v852_v3, %v851_v7  ;;  %v3067_v7 = vld [vmem:[%s4459_s2 + $0x1b] ss:$0 sm:$0xff] }
 0x62a   : > { %3329 = vmatprep.mubr.msk.bf16.mxu0 %vm720_vm5, %v860_v9 }
 0x62b   : > { %3320 = vmatpush3.bf16.msra.mxu1 %v1001_v4  ;;  %3330 = vmatmul.mubr.msk.bf16.vlgmr.msra.gmra.mrb[12].mxu0 %vm720_vm5, %v861_v10 }
 0x62c   : > { %3340 = vmatpush3.bf16.msra.mxu0 %v1182_v12  ;;  %3501 = vmatprep.subr.msk.bf16.mxu1 %vm1123_vm7, %v274_v6 }
 0x62d   : > { %3504 = vmatprep.subr.msk.bf16.mxu0 %vm1123_vm7, %v276_v16 }
 0x62e   : > { %3322 = vmatmul.mubr.msk.bf16.vlgmr.msra.gmra.mrb[20].mxu1 %vm720_vm5, %v859_v13 }
 0x62f   : > { %3334 = vmatpush3.bf16.msra.mxu1 %v1125_v1 }
 0x630   : > { %3503 = vmatprep.subr.msk.bf16.mxu1 %vm1123_vm7, %v275_v14 }
 0x69c   : > { %v3307_v19 = vpop.f32.mrb[12].mxu1 }
 0x69d   : > { %v913_v20 = vpop.f32.mrb[13].mxu1  ;;  %v1114_v18 = vpack.c.bf16 %v3307_v19, %v3307_v19 }
 0x69e   : > { %v3308_v5 = vpop.f32.mrb[14].mxu1 }
 0x69f   : > { %v916_v22 = vpop.f32.mrb[15].mxu1 }
 0x6a0   : > { %v1113_v17 = vpack.c.bf16 %v916_v22, %v913_v20 }
 0x6a2   : > { %3341 = vmatprep.mubr.msk.bf16.mxu0 %vm461_vm3, %v1113_v17 }
 0x6a3   : > { %3342 = vmatmul.mubr.msk.bf16.vlgmr.msra.gmra.mrb[16].mxu0 %vm461_vm3, %v1114_v18 }
 0x6a4   : > { %3352 = vmatpush3.bf16.msra.mxu0 %v1303_v24 }
 0x6f9   : > { %v3315_v26 = vpop.f32.mrb[16].mxu1 }
 0x6fa   : > { %v975_v28 = vpop.f32.mrb[17].mxu1  ;;  %v1116_v30 = vpack.c.bf16 %v3315_v26, %v3315_v26 }
 0x6fb   : > { %v3316_v29 = vpop.f32.mrb[18].mxu1 }
 0x6fc   : > { %v978_v31 = vpop.f32.mrb[19].mxu1 }
 0x6fd   : > { %v1115_v32 = vpack.c.bf16 %v978_v31, %v975_v28 }
 0x6fe   : > { %v3331_v27 = vpop.f32.mrb[12].mxu0 }
 0x6ff   : > { %v1099_v34 = vpop.f32.mrb[13].mxu0  ;;  %3335 = vmatprep.mubr.msk.bf16.mxu1 %vm461_vm3, %v1115_v32  ;;  %v1295_v21 = vpack.c.bf16 %v3331_v27, %v3331_v27  ;;  %v3571_v27 = vld [vmem:[%s4458_s1 + $0x58] sm:$0xff]  }
 0x700   : > { %v3332_v35 = vpop.f32.mrb[14].mxu0  ;;  %3336 = vmatmul.mubr.msk.bf16.vlgmr.msra.gmra.mrb[24].mxu1 %vm461_vm3, %v1116_v30 }
 0x701   : > { %v1102_v36 = vpop.f32.mrb[15].mxu0  ;;  %3346 = vmatpush3.bf16.msra.mxu1 %v1241_v33  ;;  %v3323_v37 = vpop.f32.mrb[20].mxu1  ;;  %v3572_v33 = vld [vmem:[%s4458_s1 + $0x60] sm:$0xff]  }
 0x702   : > { %v1294_v23 = vpack.c.bf16 %v1102_v36, %v1099_v34  ;;  %v1037_v38 = vpop.f32.mrb[21].mxu1  ;;  %v1233_v41 = vpack.c.bf16 %v3323_v37, %v3323_v37  ;;  %3357 = vmatprep.subr.bf16.mxu1 %v3571_v27 }
 0x703   : > { %v3324_v25 = vpop.f32.mrb[22].mxu1 }
 0x704   : > { %3353 = vmatprep.mubr.msk.bf16.mxu0 %vm461_vm3, %v1294_v23  ;;  %v1040_v39 = vpop.f32.mrb[23].mxu1 }
 0x705   : > { %v1232_v40 = vpack.c.bf16 %v1040_v39, %v1037_v38  ;;  %3354 = vmatmul.mubr.msk.bf16.vlgmr.msra.gmra.mrb[20].mxu0 %vm461_vm3, %v1295_v21 }
 0x707   : > { %3347 = vmatprep.mubr.msk.bf16.mxu1 %vm461_vm3, %v1232_v40 }
 0x708   : > { %3348 = vmatmul.mubr.msk.bf16.vlgmr.msra.gmra.mrb[28].mxu1 %vm461_vm3, %v1233_v41 }
 0x709   : > { %3358 = vmatpush3.bf16.msra.mxu1 %v3571_v27 }
 0x70a   : > { %3359 = vmatprep.subr.bf16.mxu1 %v3572_v33 }
 0x70d   : > { %3360 = vmatpush3.bf16.msra.mxu1 %v3572_v33 }
 0x776   : > { %v3343_v42 = vpop.f32.mrb[16].mxu0 }
 0x777   : > { %v1218_v44 = vpop.f32.mrb[17].mxu0 }
 0x778   : > { %v3344_v45 = vpop.f32.mrb[18].mxu0 }
 0x779   : > { %v1221_v46 = vpop.f32.mrb[19].mxu0 }
 0x7d3   : > { %v3337_v47 = vpop.f32.mrb[24].mxu1 }
 0x7d4   : > { %v1227_v49 = vadd.f32 %v3343_v42, %v3337_v47  ;;  %v1161_v50 = vpop.f32.mrb[25].mxu1  ;;  %v3068_v42 = vld [vmem:[%s4459_s2 + $0x1c] ss:$0 sm:$0xff] }
 0x7d5   : > { %v1219_v51 = vadd.f32 %v1218_v44, %v1161_v50  ;;  %v3338_v53 = vpop.f32.mrb[26].mxu1  ;;  %v3069_v50 = vld [vmem:[%s4459_s2 + $0x1d] ss:$0 sm:$0xff] }
 0x7d6   : > { %v1164_v52 = vpop.f32.mrb[27].mxu1 }
 0x7d7   : > { %v1222_v54 = vadd.f32 %v1221_v46, %v1164_v52 }
 0x7d8   : > { %v3355_v56 = vpop.f32.mrb[20].mxu0 }
 0x7d9   : > { %v1339_v57 = vpop.f32.mrb[21].mxu0 }
 0x7da   : > { %v3356_v58 = vpop.f32.mrb[22].mxu0 }
 0x7db   : > { %v1342_v59 = vpop.f32.mrb[23].mxu0  ;;  %v3349_v61 = vpop.f32.mrb[28].mxu1 }
 0x7dc   : > { %v1293_v62 = vadd.f32 %v3349_v61, %v1227_v49  ;;  %v1277_v63 = vpop.f32.mrb[29].mxu1  ;;  %v3574_v61 = vld [vmem:[%s4458_s1 + $0x80] sm:$0xff]  }
 0x7dd   : > { %v1291_v43 = vadd.f32 %v1277_v63, %v1219_v51  ;;  %v3350_v48 = vpop.f32.mrb[30].mxu1  ;;  %v3576_v63 = vld [vmem:[%s4458_s1 + $0x90] sm:$0xff]  }
 0x7de   : > { %v1355_v0 = vadd.f32 %v3355_v56, %v1293_v62  ;;  %v1280_v2 = vpop.f32.mrb[31].mxu1  ;;  %v3575_v62 = vld [vmem:[%s4458_s1 + $0x88] sm:$0xff]  }
 0x7df   : > { %v1353_v3 = vadd.f32 %v1339_v57, %v1291_v43  ;;  %v1292_v4 = vadd.f32 %v1280_v2, %v1222_v54  ;;  %v3070_v43 = vld [vmem:[%s4459_s2 + $0x1e] ss:$0 sm:$0xff] }
 0x7e0   : > { %v1358_v55 = vadd.f32 %v1355_v0, %v3786_v8 }
 0x7e1   : > { %v1356_v9 = vadd.f32 %v1353_v3, %v3791_v11  ;;  %v1354_v10 = vadd.f32 %v1342_v59, %v1292_v4  ;;  %v3573_v59 = vld [vmem:[%s4458_s1 + $0x78] sm:$0xff]  }
 0x7e2   : > { %v4078_v14 = vadd.f32 %v3067_v7, %v1358_v55  ;;  %3365 = vmatprep.subr.bf16.mxu0 %v3573_v59 }
 0x7e3   : > { %v1357_v12 = vadd.f32 %v1354_v10, %v3795_v15  ;;  %v4072_v6 = vadd.f32 %v3067_v7, %v1356_v9  ;;  %3366 = vmatpush3.bf16.msra.mxu0 %v3573_v59 }
 0x7e4   : > { %v1372_v8 = vsel %vm296_vm1, %v4078_v14, 0.0  ;;  %3367 = vmatprep.subr.bf16.mxu0 %v3574_v61 }
 0x7e5   : > { %v1366_v13 = vsel %vm289_vm2, %v4072_v6, 0.0  ;;  %v4076_v1 = vadd.f32 %v3067_v7, %v1357_v12 }
 0x7e6   : > { %1367 = vadd.xlane.f32.xlu0 %v1366_v13 }
 0x7e7   : > { %v1369_v16 = vsel %vm289_vm2, %v4076_v1, 0.0  ;;  %3368 = vmatpush3.bf16.msra.mxu0 %v3574_v61 }
 0x7e8   : > { %1370 = vadd.xlane.f32.xlu1 %v1369_v16  ;;  %3369 = vmatprep.subr.bf16.mxu0 %v3575_v62 }
 0x7ea   : > { %1373 = vadd.xlane.f32.xlu0 %v1372_v8 }
 0x7eb   : > { %3370 = vmatpush3.bf16.msra.mxu0 %v3575_v62 }
 0x7ec   : > { %3371 = vmatprep.subr.bf16.mxu0 %v3576_v63 }
 0x7ef   : > { %3372 = vmatpush3.bf16.msra.mxu0 %v3576_v63 }
 0x873   : > { %v1368_v11 = vpop.xlane.xlu0 %1367 }
 0x874   : > { %v1375_v15 = vmul.f32 0.03125, %v1368_v11 }
 0x875   : > { %v1371_v19 = vpop.xlane.xlu1 %1370 }
 0x876   : > { %v1378_v20 = vsub.f32 %v4072_v6, %v1375_v15  ;;  %v1376_v5 = vmul.f32 0.03125, %v1371_v19 }
 0x877   : > { %v1374_v22 = vpop.xlane.xlu0 %1373 }
 0x878   : > { %v1379_v17 = vsub.f32 %v4076_v1, %v1376_v5  ;;  %v1377_v18 = vmul.f32 0.03125, %v1374_v22  ;;  %v1381_v24 = vmul.f32 %v1378_v20, %v1378_v20 }
 0x87a   : > { %v1380_v26 = vsub.f32 %v4078_v14, %v1377_v18  ;;  %v1384_v28 = vsel %vm289_vm2, %v1381_v24, 0.0  ;;  %v1382_v29 = vmul.f32 %v1379_v17, %v1379_v17 }
 0x87b   : > { %1385 = vadd.xlane.f32.xlu0 %v1384_v28 }
 0x87c   : > { %v1383_v31 = vmul.f32 %v1380_v26, %v1380_v26  ;;  %v1387_v32 = vsel %vm289_vm2, %v1382_v29, 0.0 }
 0x87e   : > { %v1390_v30 = vsel %vm296_vm1, %v1383_v31, 0.0 }
 0x87f   : > { %1388 = vadd.xlane.f32.xlu0 %v1387_v32  ;;  %1391 = vadd.xlane.f32.xlu1 %v1390_v30 }
 0x908   : > { %v1386_v34 = vpop.xlane.xlu0 %1385 }
 0x909   : > { %v1393_v35 = vmul.f32 0.03125, %v1386_v34 }
 0x90b   : > { %v1396_v36 = vadd.f32 1e-06, %v1393_v35 }
 0x90c   : > { %v1392_v37 = vpop.xlane.xlu1 %1391  ;;  %v1389_v23 = vpop.xlane.xlu0 %1388 }
 0x90d   : > { %3639 = vrsqrt.f32 %v1396_v36  ;;  %v1395_v38 = vmul.f32 0.03125, %v1392_v37  ;;  %v1394_v21 = vmul.f32 0.03125, %v1389_v23 }
 0x90f   : > { %v1398_v25 = vadd.f32 1e-06, %v1395_v38  ;;  %v1397_v39 = vadd.f32 1e-06, %v1394_v21 }
 0x911   : > { %3641 = vrsqrt.f32 %v1398_v25  ;;  %v3081_v25 = vld [vmem:[%s4459_s2 + $0x1f] ss:$0 sm:$0xff] }
 0x912   : > { %3643 = vrsqrt.f32 %v1397_v39 }
 0x917   : > { %v3640_v40 = vpop.eup %3639 }
 0x918   : > { %v1402_v41 = vmul.f32 %v3640_v40, %v1378_v20 }
 0x91a   : > { %v1409_v49 = vmul.f32 %v3068_v42, %v1402_v41 }
 0x91b   : > { %v3642_v44 = vpop.eup %3641 }
 0x91c   : > { %v3644_v45 = vpop.eup %3643  ;;  %v1404_v46 = vmul.f32 %v3642_v44, %v1380_v26  ;;  %v1416_v54 = vadd.f32 %v3069_v50, %v1409_v49 }
 0x91d   : > { %v1403_v47 = vmul.f32 %v3644_v45, %v1379_v17 }
 0x91e   : > { %v1411_v51 = vmul.f32 %v3068_v42, %v1404_v46 }
 0x91f   : > { %v1410_v53 = vmul.f32 %v3068_v42, %v1403_v47 }
 0x920   : > { %v1418_v52 = vadd.f32 %v3069_v50, %v1411_v51 }
 0x921   : > { %v1417_v56 = vadd.f32 %v3069_v50, %v1410_v53 }
 0x922   : > { %v1420_v57 = vpack.c.bf16 %v1418_v52, %v1418_v52 }
 0x923   : > { %v1419_v58 = vpack.c.bf16 %v1417_v56, %v1416_v54 }
 0x925   : > { %3361 = vmatprep.mubr.msk.bf16.mxu1 %vm289_vm2, %v1419_v58 }
 0x926   : > { %3362 = vmatmul.mubr.msk.bf16.vlgmr.msra.gmra.mrb[32].mxu1 %vm289_vm2, %v1420_v57 }
 0x9f9   : > { %v3363_v48 = vpop.f32.mrb[32].mxu1 }
 0x9fa   : > { %v1486_v0 = vadd.f32 %v3363_v48, %v3070_v43  ;;  %v1477_v2 = vpop.f32.mrb[33].mxu1 }
 0x9fb   : > { %v1478_v3 = vadd.f32 %v3070_v43, %v1477_v2  ;;  %v3364_v4 = vpop.f32.mrb[34].mxu1  ;;  %v3577_v2 = vld [vmem:[%s4458_s1 + $0x28] sm:$0xff]  }
 0x9fc   : > { %v1493_v7 = vmul.f32 %v1486_v0, %v1486_v0  ;;  %v1480_v55 = vpop.f32.mrb[35].mxu1  ;;  %3377 = vmatprep.subr.bf16.mxu1 %v3577_v2 }
 0x9fd   : > { %v1491_v9 = vmul.f32 %v1478_v3, %v1478_v3  ;;  %v1481_v10 = vadd.f32 %v3070_v43, %v1480_v55  ;;  %3378 = vmatpush3.bf16.msra.mxu1 %v3577_v2 }
 0x9fe   : > { %v1496_v12 = vmul.f32 %v1493_v7, %v1486_v0 }
 0x9ff   : > { %v1494_v13 = vmul.f32 %v1491_v9, %v1478_v3  ;;  %v1492_v16 = vmul.f32 %v1481_v10, %v1481_v10 }
 0xa00   : > { %v1499_v8 = vmul.f32 0.044715, %v1496_v12 }
 0xa01   : > { %v1497_v11 = vmul.f32 0.044715, %v1494_v13  ;;  %v1495_v15 = vmul.f32 %v1492_v16, %v1481_v10 }
 0xa02   : > { %v1502_v19 = vadd.f32 %v1499_v8, %v1486_v0 }
 0xa03   : > { %v1500_v20 = vadd.f32 %v1497_v11, %v1478_v3  ;;  %v1498_v5 = vmul.f32 0.044715, %v1495_v15  ;;  %v3082_v15 = vld [vmem:[%s4459_s2 + $0x20] ss:$0 sm:$0xff] }
 0xa04   : > { %v1505_v22 = vmul.f32 0.7978846, %v1502_v19 }
 0xa05   : > { %v1503_v17 = vmul.f32 0.7978846, %v1500_v20  ;;  %v1501_v18 = vadd.f32 %v1498_v5, %v1481_v10 }
 0xa06   : > { %3645 = vtanh.f32 %v1505_v22 }
 0xa07   : > { %3647 = vtanh.f32 %v1503_v17  ;;  %v1504_v24 = vmul.f32 0.7978846, %v1501_v18  ;;  %v3083_v18 = vld [vmem:[%s4459_s2 + $0x21] ss:$0 sm:$0xff] }
 0xa09   : > { %3649 = vtanh.f32 %v1504_v24 }
 0xa10   : > { %v3646_v26 = vpop.eup %3645 }
 0xa11   : > { %v3648_v28 = vpop.eup %3647  ;;  %v1511_v29 = vadd.f32 1.0, %v3646_v26 }
 0xa12   : > { %v1509_v31 = vadd.f32 1.0, %v3648_v28 }
 0xa13   : > { %v3650_v32 = vpop.eup %3649  ;;  %v1514_v30 = vmul.f32 0.5, %v1511_v29 }
 0xa14   : > { %v1512_v27 = vmul.f32 0.5, %v1509_v31  ;;  %v1510_v33 = vadd.f32 1.0, %v3650_v32 }
 0xa15   : > { %v1517_v35 = vmul.f32 %v1514_v30, %v1486_v0 }
 0xa16   : > { %v1513_v34 = vmul.f32 0.5, %v1510_v33  ;;  %v1515_v36 = vmul.f32 %v1512_v27, %v1478_v3  ;;  %v3578_v3 = vld [vmem:[%s4458_s1 + $0x30] sm:$0xff]   ;;  %v3084_v33 = vld [vmem:[%s4459_s2 + $0x22] ss:$0 sm:$0xff] }
 0xa17   : > { %v1519_v38 = vpack.c.bf16 %v1517_v35, %v1517_v35  ;;  %3379 = vmatprep.subr.bf16.mxu1 %v3578_v3 }
 0xa18   : > { %v1516_v37 = vmul.f32 %v1513_v34, %v1481_v10  ;;  %3380 = vmatpush3.bf16.msra.mxu1 %v3578_v3 }
 0xa1a   : > { %v1518_v23 = vpack.c.bf16 %v1516_v37, %v1515_v36 }
 0xa1c   : > { %3373 = vmatprep.mubr.msk.bf16.mxu0 %vm1544_vm8, %v1518_v23 }
 0xa1d   : > { %3374 = vmatmul.mubr.msk.bf16.vlgmr.msra.gmra.mrb[24].mxu0 %vm1544_vm8, %v1519_v38 }
 0xaf0   : > { %v3375_v21 = vpop.f32.mrb[24].mxu0 }
 0xaf1   : > { %v1585_v39 = vpop.f32.mrb[25].mxu0  ;;  %v1601_v40 = vadd.f32 %v3375_v21, %v4078_v14 }
 0xaf2   : > { %v1599_v41 = vadd.f32 %v1585_v39, %v4072_v6  ;;  %v3376_v42 = vpop.f32.mrb[26].mxu0 }
 0xaf3   : > { %v1588_v44 = vpop.f32.mrb[27].mxu0  ;;  %v4129_v47 = vadd.f32 %v3081_v25, %v1601_v40 }
 0xaf4   : > { %v4126_v45 = vadd.f32 %v3081_v25, %v1599_v41  ;;  %v1600_v46 = vadd.f32 %v1588_v44, %v4076_v1 }
 0xaf5   : > { %v1643_v6 = vsel %vm296_vm1, %v4129_v47, 0.0 }
 0xaf6   : > { %v4131_v49 = vadd.f32 %v3081_v25, %v1600_v46  ;;  %v1637_v50 = vsel %vm289_vm2, %v4126_v45, 0.0 }
 0xaf7   : > { %1638 = vadd.xlane.f32.xlu0 %v1637_v50 }
 0xaf8   : > { %v1640_v51 = vsel %vm289_vm2, %v4131_v49, 0.0 }
 0xaf9   : > { %1641 = vadd.xlane.f32.xlu1 %v1640_v51 }
 0xafb   : > { %1644 = vadd.xlane.f32.xlu0 %v1643_v6 }
 0xb84   : > { %v1639_v14 = vpop.xlane.xlu0 %1638 }
 0xb85   : > { %v1646_v53 = vmul.f32 0.03125, %v1639_v14 }
 0xb86   : > { %v1642_v52 = vpop.xlane.xlu1 %1641 }
 0xb87   : > { %v1649_v1 = vsub.f32 %v4126_v45, %v1646_v53  ;;  %v1647_v54 = vmul.f32 0.03125, %v1642_v52 }
 0xb88   : > { %v1645_v56 = vpop.xlane.xlu0 %1644 }
 0xb89   : > { %v1650_v57 = vsub.f32 %v4131_v49, %v1647_v54  ;;  %v1648_v58 = vmul.f32 0.03125, %v1645_v56  ;;  %v1652_v59 = vmul.f32 %v1649_v1, %v1649_v1 }
 0xb8b   : > { %v1651_v61 = vsub.f32 %v4129_v47, %v1648_v58  ;;  %v1655_v62 = vsel %vm289_vm2, %v1652_v59, 0.0  ;;  %v1653_v63 = vmul.f32 %v1650_v57, %v1650_v57 }
 0xb8c   : > { %1656 = vadd.xlane.f32.xlu1 %v1655_v62 }
 0xb8d   : > { %v1658_v43 = vsel %vm289_vm2, %v1653_v63, 0.0  ;;  %v1654_v48 = vmul.f32 %v1651_v61, %v1651_v61 }
 0xb8e   : > { %1659 = vadd.xlane.f32.xlu0 %v1658_v43 }
 0xb8f   : > { %v1661_v0 = vsel %vm296_vm1, %v1654_v48, 0.0 }
 0xb90   : > { %1662 = vadd.xlane.f32.xlu1 %v1661_v0 }
 0xc19   : > { %v1657_v4 = vpop.xlane.xlu1 %1656 }
 0xc1a   : > { %v1664_v7 = vmul.f32 0.03125, %v1657_v4 }
 0xc1b   : > { %v1660_v55 = vpop.xlane.xlu0 %1659 }
 0xc1c   : > { %v1667_v9 = vadd.f32 1e-06, %v1664_v7  ;;  %v1665_v10 = vmul.f32 0.03125, %v1660_v55 }
 0xc1d   : > { %v1663_v12 = vpop.xlane.xlu1 %1662 }
 0xc1e   : > { %3651 = vrsqrt.f32 %v1667_v9  ;;  %v1668_v13 = vadd.f32 1e-06, %v1665_v10  ;;  %v1666_v16 = vmul.f32 0.03125, %v1663_v12 }
 0xc20   : > { %3653 = vrsqrt.f32 %v1668_v13  ;;  %v1669_v8 = vadd.f32 1e-06, %v1666_v16 }
 0xc22   : > { %3655 = vrsqrt.f32 %v1669_v8 }
 0xc28   : > { %v3652_v11 = vpop.eup %3651 }
 0xc29   : > { %v1673_v19 = vmul.f32 %v3652_v11, %v1649_v1 }
 0xc2a   : > { %v3654_v20 = vpop.eup %3653 }
 0xc2b   : > { %v1674_v5 = vmul.f32 %v3654_v20, %v1650_v57  ;;  %v1680_v22 = vmul.f32 %v3082_v15, %v1673_v19 }
 0xc2c   : > { %v3656_v17 = vpop.eup %3655 }
 0xc2d   : > { %v1675_v24 = vmul.f32 %v3656_v17, %v1651_v61  ;;  %v1681_v26 = vmul.f32 %v3082_v15, %v1674_v5  ;;  %v1687_v28 = vadd.f32 %v3083_v18, %v1680_v22 }
 0xc2f   : > { %v1688_v29 = vadd.f32 %v3083_v18, %v1681_v26  ;;  %v1682_v31 = vmul.f32 %v3082_v15, %v1675_v24 }
 0xc31   : > { %v1690_v32 = vpack.c.bf16 %v1688_v29, %v1687_v28  ;;  %v1689_v30 = vadd.f32 %v3083_v18, %v1682_v31 }
 0xc33   : > { %3381 = vmatprep.mubr.msk.bf16.mxu1 %vm289_vm2, %v1690_v32  ;;  %v1691_v27 = vpack.c.bf16 %v1689_v30, %v1689_v30 }
 0xc35   : > { %3382 = vmatmul.mubr.msk.bf16.vlgmr.msra.gmra.mrb[36].mxu1 %vm289_vm2, %v1691_v27 }
 0xd08   : > { %v3383_v34 = vpop.f32.mrb[36].mxu1 }
 0xd09   : > { %v1757_v35 = vadd.f32 %v3383_v34, %v3084_v33  ;;  %v1748_v36 = vpop.f32.mrb[37].mxu1 }
 0xd0a   : > { %v3384_v37 = vpop.f32.mrb[38].mxu1  ;;  %v1749_v38 = vadd.f32 %v3084_v33, %v1748_v36 }
 0xd0b   : > { %1769 = vrot.lane.b32.xlu1 %v1757_v35, %s3731_s15  ;;  %v1751_v23 = vpop.f32.mrb[39].mxu1  ;;  %v4174_v40 = vpack.c.bf16 %v1757_v35, %v1757_v35 }
 0xd0c   : > { %v1752_v21 = vadd.f32 %v3084_v33, %v1751_v23 }
 0xd0e   : > { %v3552_v25 = vpack.i.bf16 %v1752_v21, %v1749_v38  ;;  %v4163_v39 = vpack.c.bf16 %v1752_v21, %v1749_v38 }
 0xd10   : > { %3553 = vrot.lane.b32.xlu1 %v3552_v25, %s3732_s16  ;;  %3548 = vrot.lane.b32.xlu0 %v3552_v25, %s3731_s15 }
 0xd11   : > { %3389 = vmatprep.mubr.msk.bf16.mxu1 %vm461_vm3, %v4163_v39 }
 0xd14   : > { %3558 = vrot.lane.b32.xlu1 %v3552_v25, %s3733_s17  ;;  %1778 = vrot.lane.b32.xlu0 %v1757_v35, %s3732_s16 }
 0xd18   : > { %1787 = vrot.lane.b32.xlu1 %v1757_v35, %s3733_s17  ;;  %1802 = vrot.lane.b32.xlu0 %v4163_v39, %s3734_s18 }
 0xd1c   : > { %1804 = vrot.lane.b32.xlu0 %v4174_v40, %s3734_s18 }
 0xd7d   : > { %v1770_v41 = vpop.permute.xlu1 %1769 }
 0xd7e   : > { %v4188_v54 = vpack.c.bf16 %v1770_v41, %v1770_v41 }
 0xd82   : > { %v3554_v42 = vpop.permute.xlu1 %3553  ;;  %v3549_v44 = vpop.permute.xlu0 %3548 }
 0xd83   : > { %v3556_v46 = vunpack.i.h.bf16 %v3554_v42  ;;  %v3555_v50 = vunpack.i.l.bf16 %v3554_v42  ;;  %v3551_v51 = vunpack.i.h.bf16 %v3549_v44  ;;  %v3550_v6 = vunpack.i.l.bf16 %v3549_v44 }
 0xd85   : > { %v4178_v14 = vpack.c.bf16 %v3556_v46, %v3555_v50  ;;  %v4180_v53 = vpack.c.bf16 %v3551_v51, %v3550_v6 }
 0xd86   : > { %v3559_v52 = vpop.permute.xlu1 %3558  ;;  %v1779_v1 = vpop.permute.xlu0 %1778 }
 0xd87   : > { %1868 = vrot.lane.b32.xlu1 %v4180_v53, %s3734_s18  ;;  %3397 = vmatprep.mubr.msk.bf16.mxu0 %vm461_vm3, %v4180_v53  ;;  %v3561_v56 = vunpack.i.h.bf16 %v3559_v52  ;;  %v3560_v57 = vunpack.i.l.bf16 %v3559_v52  ;;  %v4190_v58 = vpack.c.bf16 %v1779_v1, %v1779_v1 }
 0xd88   : > { %1934 = vrot.lane.b32.xlu0 %v4178_v14, %s3734_s18 }
 0xd89   : > { %v4198_v62 = vpack.c.bf16 %v3561_v56, %v3560_v57 }
 0xd8a   : > { %v1803_v59 = vpop.permute.xlu0 %1802  ;;  %v1788_v63 = vpop.permute.xlu1 %1787 }
 0xd8b   : > { %v1813_v61 = vsel %vm461_vm3, %v1803_v59, 0  ;;  %1870 = vrot.lane.b32.xlu1 %v4188_v54, %s3734_s18  ;;  %3505 = vmatprep.subr.msk.bf16.mxu1 %vm461_vm3, %v1803_v59  ;;  %v4203_v48 = vpack.c.bf16 %v1788_v63, %v1788_v63 }
 0xd8c   : > { %1936 = vrot.lane.b32.xlu0 %v4190_v58, %s3734_s18  ;;  %3386 = vmatpush3.bf16.xpose.msra.mxu1 %v1813_v61 }
 0xd8e   : > { %v1805_v43 = vpop.permute.xlu0 %1804 }
 0xd8f   : > { %2000 = vrot.lane.b32.xlu1 %v4198_v62, %s3734_s18  ;;  %3506 = vmatprep.subr.msk.bf16.mxu1 %vm461_vm3, %v1805_v43  ;;  %v1816_v0 = vsel %vm461_vm3, %v1805_v43, 0 }
 0xd93   : > { %2002 = vrot.lane.b32.xlu1 %v4203_v48, %s3734_s18 }
 0xd94   : > { %3388 = vmatpush3.bf16.xpose.msra.mxu1 %v1816_v0 }
 0xd9b   : > { %3390 = vmatmul.mubr.msk.bf16.vlgmr.msra.gmra.mrb[40].mxu1 %vm461_vm3, %v4174_v40 }
 0xd9c   : > { %3405 = vmatprep.mubr.msk.bf16.mxu1 %vm461_vm3, %v4178_v14 }
 0xdf9   : > { %v1869_v2 = vpop.permute.xlu1 %1868 }
 0xdfa   : > { %v1879_v3 = vsel %vm461_vm3, %v1869_v2, 0  ;;  %v1935_v4 = vpop.permute.xlu0 %1934  ;;  %3507 = vmatprep.subr.msk.bf16.mxu0 %vm461_vm3, %v1869_v2 }
 0xdfb   : > { %v1945_v7 = vsel %vm461_vm3, %v1935_v4, 0  ;;  %3509 = vmatprep.subr.msk.bf16.mxu1 %vm461_vm3, %v1935_v4  ;;  %3394 = vmatpush3.bf16.xpose.msra.mxu0 %v1879_v3 }
 0xdfc   : > { %3402 = vmatpush3.bf16.xpose.msra.mxu1 %v1945_v7 }
 0xdfd   : > { %v1871_v55 = vpop.permute.xlu1 %1870 }
 0xdfe   : > { %v1937_v9 = vpop.permute.xlu0 %1936  ;;  %3508 = vmatprep.subr.msk.bf16.mxu0 %vm461_vm3, %v1871_v55  ;;  %v1882_v10 = vsel %vm461_vm3, %v1871_v55, 0 }
 0xdff   : > { %3510 = vmatprep.subr.msk.bf16.mxu1 %vm461_vm3, %v1937_v9  ;;  %v1948_v12 = vsel %vm461_vm3, %v1937_v9, 0 }
 0xe01   : > { %v2001_v13 = vpop.permute.xlu1 %2000 }
 0xe02   : > { %v2011_v16 = vsel %vm461_vm3, %v2001_v13, 0 }
 0xe03   : > { %3396 = vmatpush3.bf16.xpose.msra.mxu0 %v1882_v10 }
 0xe04   : > { %3404 = vmatpush3.bf16.xpose.msra.mxu1 %v1948_v12  ;;  %3511 = vmatprep.subr.msk.bf16.mxu0 %vm461_vm3, %v2001_v13 }
 0xe05   : > { %v2003_v8 = vpop.permute.xlu1 %2002 }
 0xe06   : > { %v2014_v11 = vsel %vm461_vm3, %v2003_v8, 0 }
 0xe0a   : > { %3398 = vmatmul.mubr.msk.bf16.vlgmr.msra.gmra.mrb[28].mxu0 %vm461_vm3, %v4188_v54 }
 0xe0b   : > { %3406 = vmatmul.mubr.msk.bf16.vlgmr.msra.gmra.mrb[44].mxu1 %vm461_vm3, %v4190_v58  ;;  %3410 = vmatpush3.bf16.xpose.msra.mxu0 %v2011_v16 }
 0xe0c   : > { %3413 = vmatprep.mubr.msk.bf16.mxu0 %vm461_vm3, %v4198_v62  ;;  %3512 = vmatprep.subr.msk.bf16.mxu0 %vm461_vm3, %v2003_v8 }
 0xe13   : > { %3412 = vmatpush3.bf16.xpose.msra.mxu0 %v2014_v11 }
 0xe1a   : > { %3414 = vmatmul.mubr.msk.bf16.vlgmr.msra.gmra.mrb[32].mxu0 %vm461_vm3, %v4203_v48 }
 0xe6e   : > { %v3391_v15 = vpop.f32.mrb[40].mxu1 }
 0xe6f   : > { %v1852_v19 = vpop.f32.mrb[41].mxu1  ;;  %v2070_v20 = vsel %vm727_vm4, %v3391_v15, -inf }
 0xe70   : > { %2071 = vmax.xlane.f32.xlu0 %v2070_v20  ;;  %v3392_v5 = vpop.f32.mrb[42].mxu1  ;;  %v2064_v18 = vsel %vm720_vm5, %v1852_v19, -inf }
 0xe71   : > { %v1855_v22 = vpop.f32.mrb[43].mxu1 }
 0xe72   : > { %v2067_v17 = vsel %vm720_vm5, %v1855_v22, -inf }
 0xe73   : > { %2068 = vmax.xlane.f32.xlu1 %v2067_v17 }
 0xe74   : > { %2065 = vmax.xlane.f32.xlu0 %v2064_v18 }
 0xedd   : > { %v3399_v24 = vpop.f32.mrb[28].mxu0 }
 0xede   : > { %v4235_v26 = vpop.f32.mrb[44].mxu1  ;;  %v4237_v28 = vpop.f32.mrb[29].mxu0  ;;  %v2079_v29 = vsel %vm727_vm4, %v3399_v24, -inf }
 0xedf   : > { %v4240_v31 = vpop.f32.mrb[45].mxu1  ;;  %v3400_v32 = vpop.f32.mrb[30].mxu0  ;;  %2080 = vmax.xlane.f32.xlu1 %v2079_v29  ;;  %v2073_v30 = vsel %vm720_vm5, %v4237_v28, -inf  ;;  %v2088_v23 = vsel %vm727_vm4, %v4235_v26, -inf }
 0xee0   : > { %v3408_v27 = vpop.f32.mrb[46].mxu1  ;;  %v1921_v33 = vpop.f32.mrb[31].mxu0  ;;  %2074 = vmax.xlane.f32.xlu0 %v2073_v30  ;;  %v2082_v37 = vsel %vm720_vm5, %v4240_v31, -inf }
 0xee1   : > { %v1987_v34 = vpop.f32.mrb[47].mxu1  ;;  %v2076_v36 = vsel %vm720_vm5, %v1921_v33, -inf }
 0xee2   : > { %v2085_v35 = vsel %vm720_vm5, %v1987_v34, -inf }
 0xee3   : > { %2086 = vmax.xlane.f32.xlu1 %v2085_v35 }
 0xee4   : > { %2077 = vmax.xlane.f32.xlu0 %v2076_v36 }
 0xee8   : > { %2083 = vmax.xlane.f32.xlu0 %v2082_v37 }
 0xeec   : > { %2089 = vmax.xlane.f32.xlu0 %v2088_v23 }
 0xeed   : > { %v4250_v38 = vpop.f32.mrb[32].mxu0 }
 0xeee   : > { %v4252_v21 = vpop.f32.mrb[33].mxu0  ;;  %v2097_v46 = vsel %vm727_vm4, %v4250_v38, -inf }
 0xeef   : > { %v3416_v25 = vpop.f32.mrb[34].mxu0  ;;  %v2091_v41 = vsel %vm720_vm5, %v4252_v21, -inf }
 0xef0   : > { %v4256_v42 = vpop.f32.mrb[35].mxu0  ;;  %2092 = vmax.xlane.f32.xlu1 %v2091_v41 }
 0xef1   : > { %v2094_v44 = vsel %vm720_vm5, %v4256_v42, -inf }
 0xef2   : > { %2095 = vmax.xlane.f32.xlu0 %v2094_v44 }
 0xef4   : > { %2098 = vmax.xlane.f32.xlu1 %v2097_v46 }
 0xefd   : > { %v2072_v50 = vpop.xlane.xlu0 %2071 }
 0xefe   : > { %v2102_v51 = vsub.f32 %v3391_v15, %v2072_v50 }
 0xf00   : > { %v2116_v52 = vmul.f32 1.442695, %v2102_v51  ;;  %v2069_v1 = vpop.xlane.xlu1 %2068 }
 0xf01   : > { %v2066_v6 = vpop.xlane.xlu0 %2065  ;;  %v2101_v56 = vsub.f32 %v1855_v22, %v2069_v1 }
 0xf02   : > { %3657 = vpow2.f32 %v2116_v52 }
 0xf05   : > { %2266 = vrot.lane.b32.xlu1 %v4180_v53, %s3735_s19  ;;  %v2100_v53 = vsub.f32 %v1852_v19, %v2066_v6 }
 0xf08   : > { %2204 = vrot.lane.b32.xlu0 %v4163_v39, %s3735_s19  ;;  %v2112_v39 = vmul.f32 1.442695, %v2100_v53 }
 0xf09   : > { %2206 = vrot.lane.b32.xlu1 %v4174_v40, %s3735_s19  ;;  %v2114_v40 = vmul.f32 1.442695, %v2101_v56 }
 0xf0a   : > { %3659 = vpow2.f32 %v2112_v39 }
 0xf0b   : > { %3661 = vpow2.f32 %v2114_v40 }
 0xf0c   : > { %2328 = vrot.lane.b32.xlu0 %v4178_v14, %s3735_s19  ;;  %v4274_v57 = vpop.eup %3657 }
 0xf0d   : > { %2268 = vrot.lane.b32.xlu1 %v4188_v54, %s3735_s19  ;;  %v2142_v14 = vsel %vm727_vm4, %v4274_v57, 0.0 }
 0xf11   : > { %2330 = vrot.lane.b32.xlu1 %v4190_v58, %s3735_s19 }
 0xf14   : > { %v4278_v54 = vpop.eup %3659 }
 0xf15   : > { %v2136_v58 = vsel %vm720_vm5, %v4278_v54, 0.0  ;;  %v4282_v59 = vpop.eup %3661 }
 0xf16   : > { %v2139_v61 = vsel %vm720_vm5, %v4282_v59, 0.0 }
 0xf2b   : > { %2143 = vadd.xlane.f32.xlu0 %v2142_v14 }
 0xf2f   : > { %2137 = vadd.xlane.f32.xlu0 %v2136_v58 }
 0xf35   : > { %2140 = vadd.xlane.f32.xlu1 %v2139_v61 }
 0xf6c   : > { %v2081_v63 = vpop.xlane.xlu1 %2080 }
 0xf6d   : > { %v2105_v43 = vsub.f32 %v3399_v24, %v2081_v63  ;;  %v2075_v0 = vpop.xlane.xlu0 %2074 }
 0xf6e   : > { %v2103_v13 = vsub.f32 %v4237_v28, %v2075_v0 }
 0xf6f   : > { %v2122_v2 = vmul.f32 1.442695, %v2105_v43 }
 0xf70   : > { %v2087_v3 = vpop.xlane.xlu1 %2086  ;;  %v2118_v15 = vmul.f32 1.442695, %v2103_v13 }
 0xf71   : > { %3663 = vpow2.f32 %v2122_v2  ;;  %v2107_v4 = vsub.f32 %v1987_v34, %v2087_v3  ;;  %v2078_v7 = vpop.xlane.xlu0 %2077 }
 0xf72   : > { %v2104_v55 = vsub.f32 %v1921_v33, %v2078_v7 }
 0xf73   : > { %v2126_v9 = vmul.f32 1.442695, %v2107_v4 }
 0xf74   : > { %v2120_v10 = vmul.f32 1.442695, %v2104_v55 }
 0xf75   : > { %v2084_v12 = vpop.xlane.xlu0 %2083 }
 0xf76   : > { %3665 = vpow2.f32 %v2120_v10  ;;  %v2106_v19 = vsub.f32 %v4240_v31, %v2084_v12 }
 0xf77   : > { %3667 = vpow2.f32 %v2126_v9 }
 0xf78   : > { %v2124_v28 = vmul.f32 1.442695, %v2106_v19 }
 0xf79   : > { %v2090_v16 = vpop.xlane.xlu0 %2089 }
 0xf7a   : > { %v2108_v8 = vsub.f32 %v4235_v26, %v2090_v16 }
 0xf7b   : > { %v4288_v11 = vpop.eup %3663 }
 0xf7c   : > { %v2128_v20 = vmul.f32 1.442695, %v2108_v8  ;;  %v2151_v5 = vsel %vm727_vm4, %v4288_v11, 0.0 }
 0xf7d   : > { %2152 = vadd.xlane.f32.xlu1 %v2151_v5  ;;  %v2093_v22 = vpop.xlane.xlu1 %2092 }
 0xf7e   : > { %3669 = vpow2.f32 %v2128_v20  ;;  %v2109_v17 = vsub.f32 %v4252_v21, %v2093_v22 }
 0xf7f   : > { %v2096_v18 = vpop.xlane.xlu0 %2095  ;;  %3671 = vpow2.f32 %v2118_v15 }
 0xf80   : > { %v4294_v24 = vpop.eup %3665  ;;  %v2110_v26 = vsub.f32 %v4256_v42, %v2096_v18  ;;  %v2130_v27 = vmul.f32 1.442695, %v2109_v17  ;;  %3673 = vpow2.f32 %v2124_v28 }
 0xf81   : > { %v2099_v29 = vpop.xlane.xlu1 %2098  ;;  %v2148_v31 = vsel %vm720_vm5, %v4294_v24, 0.0  ;;  %v4299_v32 = vpop.eup %3667 }
 0xf82   : > { %v2111_v30 = vsub.f32 %v4250_v38, %v2099_v29  ;;  %2149 = vadd.xlane.f32.xlu1 %v2148_v31  ;;  %v2132_v34 = vmul.f32 1.442695, %v2110_v26  ;;  %v2157_v37 = vsel %vm720_vm5, %v4299_v32, 0.0 }
 0xf83   : > { %v2205_v33 = vpop.permute.xlu0 %2204 }
 0xf84   : > { %v2134_v35 = vmul.f32 1.442695, %v2111_v30  ;;  %3417 = vmatprep.subr.bf16.mxu1 %v2205_v33 }
 0xf85   : > { %3418 = vmatpush3.bf16.msra.mxu1 %v2205_v33  ;;  %v2267_v36 = vpop.permute.xlu1 %2266 }
 0xf86   : > { %3675 = vpow2.f32 %v2134_v35  ;;  %2158 = vadd.xlane.f32.xlu1 %v2157_v37  ;;  %3425 = vmatprep.subr.bf16.mxu0 %v2267_v36  ;;  %v1622_v37 = vld [vmem:[%s4458_s1 + $0x4c] sm:$0xf] }
 0xf87   : > { %3677 = vpow2.f32 %v2130_v27  ;;  %3426 = vmatpush3.bf16.msra.mxu0 %v2267_v36  ;;  %v2329_v42 = vpop.permute.xlu0 %2328 }
 0xf88   : > { %v4304_v23 = vpop.eup %3669  ;;  %3679 = vpow2.f32 %v2132_v34 }
 0xf89   : > { %v2207_v38 = vpop.permute.xlu1 %2206  ;;  %v2160_v21 = vsel %vm727_vm4, %v4304_v23, 0.0  ;;  %v4308_v25 = vpop.eup %3671 }
 0xf8a   : > { %v2216_v41 = vand.u32 %v2207_v38, %v3975_v60  ;;  %2161 = vadd.xlane.f32.xlu0 %v2160_v21  ;;  %v2145_v46 = vsel %vm720_vm5, %v4308_v25, 0.0  ;;  %v4313_v50 = vpop.eup %3673  ;;  %v2463_v21 = vsel %vm1123_vm7, %v1622_v37, 0 }
 0xf8b   : > { %v2154_v53 = vsel %vm720_vm5, %v4313_v50, 0.0 }
 0xf8c   : > { %3419 = vmatprep.subr.bf16.mxu1 %v2216_v41 }
 0xf8d   : > { %3420 = vmatpush3.bf16.msra.mxu1 %v2216_v41  ;;  %v2269_v44 = vpop.permute.xlu1 %2268  ;;  %v1621_v41 = vld [vmem:[%s4458_s1 + $0x48] sm:$0xf] }
 0xf8e   : > { %v2278_v51 = vand.u32 %v2269_v44, %v3975_v60  ;;  %2146 = vadd.xlane.f32.xlu0 %v2145_v46  ;;  %3433 = vmatprep.subr.bf16.mxu1 %v2329_v42 }
 0xf90   : > { %v4316_v6 = vpop.eup %3675  ;;  %3427 = vmatprep.subr.bf16.mxu0 %v2278_v51 }
 0xf91   : > { %v4318_v52 = vpop.eup %3677  ;;  %3428 = vmatpush3.bf16.msra.mxu0 %v2278_v51  ;;  %v2169_v1 = vsel %vm727_vm4, %v4316_v6, 0.0  ;;  %v2331_v58 = vpop.permute.xlu1 %2330  ;;  %v1623_v51 = vld [vmem:[%s4458_s1 + $0x50] sm:$0xf] }
 0xf92   : > { %v4324_v39 = vpop.eup %3679  ;;  %2155 = vadd.xlane.f32.xlu0 %v2154_v53  ;;  %2170 = vadd.xlane.f32.xlu1 %v2169_v1  ;;  %v2163_v40 = vsel %vm720_vm5, %v4318_v52, 0.0 }
 0xf93   : > { %v2166_v56 = vsel %vm720_vm5, %v4324_v39, 0.0 }
 0xf96   : > { %2167 = vadd.xlane.f32.xlu0 %v2166_v56  ;;  %2164 = vadd.xlane.f32.xlu1 %v2163_v40 }
 0xfa7   : > { %2392 = vrot.lane.b32.xlu1 %v4203_v48, %s3735_s19 }
 0xfac   : > { %2390 = vrot.lane.b32.xlu0 %v4198_v62, %s3735_s19  ;;  %v2340_v62 = vand.u32 %v2331_v58, %v3975_v60 }
 0xfb8   : > { %v2144_v14 = vpop.xlane.xlu0 %2143 }
 0xfb9   : > { %3681 = vrcp.f32 %v2144_v14 }
 0xfbc   : > { %v2138_v61 = vpop.xlane.xlu0 %2137 }
 0xfbd   : > { %3683 = vrcp.f32 %v2138_v61 }
 0xfc2   : > { %v2141_v63 = vpop.xlane.xlu1 %2140 }
 0xfc3   : > { %3685 = vrcp.f32 %v2141_v63  ;;  %v3682_v43 = vpop.eup %3681 }
 0xfc4   : > { %v2186_v3 = vmul.f32 %v3682_v43, %v4274_v57 }
 0xfc6   : > { %v2197_v55 = vpack.c.bf16 %v2186_v3, %v2186_v3 }
 0xfc7   : > { %v3684_v0 = vpop.eup %3683 }
 0xfc8   : > { %v2184_v4 = vmul.f32 %v3684_v0, %v4278_v54 }
 0xfcd   : > { %v3686_v2 = vpop.eup %3685 }
 0xfce   : > { %v2185_v7 = vmul.f32 %v3686_v2, %v4282_v59 }
 0xfd0   : > { %v2196_v48 = vpack.c.bf16 %v2185_v7, %v2184_v4  ;;  %v2579_v7 = vsel %vm1123_vm7, %v1623_v51, 0 }
 0xfd2   : > { %3421 = vmatprep.mubr.msk.bf16.mxu1 %vm720_vm5, %v2196_v48 }
 0xfd3   : > { %3422 = vmatmul.mubr.msk.bf16.vlgmr.msra.gmra.mrb[48].mxu1 %vm720_vm5, %v2197_v55 }
 0xfd4   : > { %3434 = vmatpush3.bf16.msra.mxu1 %v2329_v42 }
 0xfd5   : > { %3435 = vmatprep.subr.bf16.mxu1 %v2340_v62 }
 0xfd8   : > { %3436 = vmatpush3.bf16.msra.mxu1 %v2340_v62 }
 0xfd9   : > { %3513 = vmatprep.subr.msk.bf16.mxu1 %vm1123_vm7, %v1622_v37 }
0x100a   : > { %v2153_v9 = vpop.xlane.xlu1 %2152 }
0x100b   : > { %3687 = vrcp.f32 %v2153_v9 }
0x100f   : > { %v2150_v10 = vpop.xlane.xlu1 %2149 }
0x1010   : > { %3689 = vrcp.f32 %v2150_v10 }
0x1013   : > { %v2159_v57 = vpop.xlane.xlu1 %2158 }
0x1015   : > { %v3688_v16 = vpop.eup %3687 }
0x1016   : > { %v2189_v5 = vmul.f32 %v3688_v16, %v4288_v11 }
0x1017   : > { %v2162_v12 = vpop.xlane.xlu0 %2161 }
0x1018   : > { %v2199_v33 = vpack.c.bf16 %v2189_v5, %v2189_v5 }
0x101a   : > { %v3690_v19 = vpop.eup %3689 }
0x101b   : > { %v2147_v54 = vpop.xlane.xlu0 %2146  ;;  %v2188_v28 = vmul.f32 %v3690_v19, %v4294_v24 }
0x101c   : > { %3691 = vrcp.f32 %v2147_v54 }
0x101d   : > { %3693 = vrcp.f32 %v2162_v12 }
0x101e   : > { %3695 = vrcp.f32 %v2159_v57 }
0x101f   : > { %v2156_v59 = vpop.xlane.xlu0 %2155  ;;  %v2171_v13 = vpop.xlane.xlu1 %2170 }
0x1020   : > { %3697 = vrcp.f32 %v2156_v59 }
0x1021   : > { %3699 = vrcp.f32 %v2171_v13 }
0x1023   : > { %v2168_v8 = vpop.xlane.xlu0 %2167  ;;  %v2165_v15 = vpop.xlane.xlu1 %2164 }
0x1024   : > { %3701 = vrcp.f32 %v2168_v8 }
0x1025   : > { %3703 = vrcp.f32 %v2165_v15 }
0x1026   : > { %v3692_v20 = vpop.eup %3691 }
0x1027   : > { %v3694_v22 = vpop.eup %3693  ;;  %v2391_v17 = vpop.permute.xlu0 %2390  ;;  %v2187_v18 = vmul.f32 %v3692_v20, %v4308_v25 }
0x1028   : > { %v3696_v26 = vpop.eup %3695  ;;  %3441 = vmatprep.subr.bf16.mxu0 %v2391_v17  ;;  %v2393_v29 = vpop.permute.xlu1 %2392  ;;  %v2192_v27 = vmul.f32 %v3694_v22, %v4304_v23 }
0x1029   : > { %v2198_v31 = vpack.c.bf16 %v2188_v28, %v2187_v18  ;;  %v2191_v11 = vmul.f32 %v3696_v26, %v4299_v32  ;;  %v2402_v36 = vand.u32 %v2393_v29, %v3975_v60 }
0x102a   : > { %v3698_v30 = vpop.eup %3697  ;;  %v2201_v23 = vpack.c.bf16 %v2192_v27, %v2192_v27 }
0x102b   : > { %3429 = vmatprep.mubr.msk.bf16.mxu0 %vm720_vm5, %v2198_v31  ;;  %v2190_v34 = vmul.f32 %v3698_v30, %v4313_v50  ;;  %v3700_v35 = vpop.eup %3699  ;;  %v2520_v50 = vsel %vm1123_vm7, %v1621_v41, 0 }
0x102c   : > { %3430 = vmatmul.mubr.msk.bf16.vlgmr.msra.gmra.mrb[36].mxu0 %vm720_vm5, %v2199_v33  ;;  %v2195_v32 = vmul.f32 %v3700_v35, %v4316_v6  ;;  %v1624_v6 = vld [vmem:[%s4458_s1 + $0x54] sm:$0xf] }
0x102d   : > { %3442 = vmatpush3.bf16.msra.mxu0 %v2391_v17  ;;  %v2200_v24 = vpack.c.bf16 %v2191_v11, %v2190_v34  ;;  %v2641_v14 = vsel %vm1123_vm7, %v1624_v6, 0 }
0x102e   : > { %v3702_v38 = vpop.eup %3701  ;;  %3443 = vmatprep.subr.bf16.mxu0 %v2402_v36  ;;  %v2203_v46 = vpack.c.bf16 %v2195_v32, %v2195_v32 }
0x102f   : > { %v3704_v25 = vpop.eup %3703  ;;  %3437 = vmatprep.mubr.msk.bf16.mxu1 %vm720_vm5, %v2200_v24  ;;  %v2194_v60 = vmul.f32 %v3702_v38, %v4324_v39 }
0x1030   : > { %3438 = vmatmul.mubr.msk.bf16.vlgmr.msra.gmra.mrb[52].mxu1 %vm720_vm5, %v2201_v23  ;;  %v2193_v42 = vmul.f32 %v3704_v25, %v4318_v52 }
0x1031   : > { %3444 = vmatpush3.bf16.msra.mxu0 %v2402_v36  ;;  %3450 = vmatpush3.bf16.msra.mxu1 %v2463_v21  ;;  %v3113_v21 = vld [vmem:[%s4459_s2 + $0x23] ss:$0 sm:$0xff] }
0x1032   : > { %v2202_v44 = vpack.c.bf16 %v2194_v60, %v2193_v42  ;;  %3514 = vmatprep.subr.msk.bf16.mxu0 %vm1123_vm7, %v1621_v41  ;;  %3515 = vmatprep.subr.msk.bf16.mxu1 %vm1123_vm7, %v1623_v51 }
0x1034   : > { %3445 = vmatprep.mubr.msk.bf16.mxu0 %vm720_vm5, %v2202_v44 }
0x1035   : > { %3446 = vmatmul.mubr.msk.bf16.vlgmr.msra.gmra.mrb[40].mxu0 %vm720_vm5, %v2203_v46 }
0x1036   : > { %3456 = vmatpush3.bf16.msra.mxu0 %v2520_v50 }
0x1037   : > { %3516 = vmatprep.subr.msk.bf16.mxu0 %vm1123_vm7, %v1624_v6 }
0x10a6   : > { %v3423_v52 = vpop.f32.mrb[48].mxu1 }
0x10a7   : > { %v2252_v53 = vpop.f32.mrb[49].mxu1  ;;  %v2453_v40 = vpack.c.bf16 %v3423_v52, %v3423_v52 }
0x10a8   : > { %v3424_v1 = vpop.f32.mrb[50].mxu1 }
0x10a9   : > { %v2255_v39 = vpop.f32.mrb[51].mxu1 }
0x10aa   : > { %v2452_v56 = vpack.c.bf16 %v2255_v39, %v2252_v53 }
0x10ac   : > { %3457 = vmatprep.mubr.msk.bf16.mxu0 %vm461_vm3, %v2452_v56 }
0x10ad   : > { %3458 = vmatmul.mubr.msk.bf16.vlgmr.msra.gmra.mrb[44].mxu0 %vm461_vm3, %v2453_v40 }
0x10ae   : > { %3468 = vmatpush3.bf16.msra.mxu0 %v2641_v14 }
0x10ff   : > { %v3431_v58 = vpop.f32.mrb[36].mxu0 }
0x1100   : > { %v2314_v61 = vpop.f32.mrb[37].mxu0  ;;  %v2455_v3 = vpack.c.bf16 %v3431_v58, %v3431_v58 }
0x1101   : > { %v3432_v63 = vpop.f32.mrb[38].mxu0 }
0x1102   : > { %v2317_v43 = vpop.f32.mrb[39].mxu0 }
0x1103   : > { %v2454_v0 = vpack.c.bf16 %v2317_v43, %v2314_v61  ;;  %v3439_v2 = vpop.f32.mrb[52].mxu1 }
0x1104   : > { %v2376_v4 = vpop.f32.mrb[53].mxu1  ;;  %v2571_v54 = vpack.c.bf16 %v3439_v2, %v3439_v2  ;;  %v3579_v2 = vld [vmem:[%s4458_s1 + $0x68] sm:$0xff]  }
0x1105   : > { %v3440_v48 = vpop.f32.mrb[54].mxu1  ;;  %3451 = vmatprep.mubr.msk.bf16.mxu1 %vm461_vm3, %v2454_v0 }
0x1106   : > { %v2379_v55 = vpop.f32.mrb[55].mxu1  ;;  %3452 = vmatmul.mubr.msk.bf16.vlgmr.msra.gmra.mrb[56].mxu1 %vm461_vm3, %v2455_v3  ;;  %v3580_v3 = vld [vmem:[%s4458_s1 + $0x70] sm:$0xff]  }
0x1107   : > { %v2570_v62 = vpack.c.bf16 %v2379_v55, %v2376_v4  ;;  %3462 = vmatpush3.bf16.msra.mxu1 %v2579_v7 }
0x1108   : > { %v3447_v9 = vpop.f32.mrb[40].mxu0  ;;  %3473 = vmatprep.subr.bf16.mxu1 %v3579_v2 }
0x1109   : > { %v2438_v10 = vpop.f32.mrb[41].mxu0  ;;  %3463 = vmatprep.mubr.msk.bf16.mxu1 %vm461_vm3, %v2570_v62  ;;  %v2633_v13 = vpack.c.bf16 %v3447_v9, %v3447_v9 }
0x110a   : > { %v3448_v12 = vpop.f32.mrb[42].mxu0 }
0x110b   : > { %v2441_v57 = vpop.f32.mrb[43].mxu0 }
0x110c   : > { %v2632_v59 = vpack.c.bf16 %v2441_v57, %v2438_v10 }
0x110e   : > { %3469 = vmatprep.mubr.msk.bf16.mxu0 %vm461_vm3, %v2632_v59  ;;  %3464 = vmatmul.mubr.msk.bf16.vlgmr.msra.gmra.mrb[60].mxu1 %vm461_vm3, %v2571_v54 }
0x110f   : > { %3470 = vmatmul.mubr.msk.bf16.vlgmr.msra.gmra.mrb[48].mxu0 %vm461_vm3, %v2633_v13  ;;  %3474 = vmatpush3.bf16.msra.mxu1 %v3579_v2  ;;  %v3114_v13 = vld [vmem:[%s4459_s2 + $0x24] ss:$0 sm:$0xff] }
0x1110   : > { %3475 = vmatprep.subr.bf16.mxu1 %v3580_v3 }
0x1113   : > { %3476 = vmatpush3.bf16.msra.mxu1 %v3580_v3 }
0x1180   : > { %v3459_v16 = vpop.f32.mrb[44].mxu0 }
0x1181   : > { %v2556_v8 = vpop.f32.mrb[45].mxu0 }
0x1182   : > { %v3460_v15 = vpop.f32.mrb[46].mxu0 }
0x1183   : > { %v2559_v19 = vpop.f32.mrb[47].mxu0 }
0x11d9   : > { %v3453_v20 = vpop.f32.mrb[56].mxu1 }
0x11da   : > { %v2565_v5 = vadd.f32 %v3459_v16, %v3453_v20  ;;  %v2499_v22 = vpop.f32.mrb[57].mxu1 }
0x11db   : > { %v2557_v17 = vadd.f32 %v2556_v8, %v2499_v22  ;;  %v3454_v18 = vpop.f32.mrb[58].mxu1 }
0x11dc   : > { %v2502_v28 = vpop.f32.mrb[59].mxu1 }
0x11dd   : > { %v2560_v26 = vadd.f32 %v2559_v19, %v2502_v28 }
0x11e1   : > { %v3465_v29 = vpop.f32.mrb[60].mxu1 }
0x11e2   : > { %v2631_v31 = vadd.f32 %v3465_v29, %v2565_v5  ;;  %v3471_v30 = vpop.f32.mrb[48].mxu0  ;;  %v2615_v27 = vpop.f32.mrb[61].mxu1  ;;  %v3115_v5 = vld [vmem:[%s4459_s2 + $0x25] ss:$0 sm:$0xff] }
0x11e3   : > { %v2629_v33 = vadd.f32 %v2615_v27, %v2557_v17  ;;  %v2677_v34 = vpop.f32.mrb[49].mxu0  ;;  %v3466_v11 = vpop.f32.mrb[62].mxu1  ;;  %v3582_v27 = vld [vmem:[%s4458_s1 + $0xa0] sm:$0xff]  }
0x11e4   : > { %v2693_v35 = vadd.f32 %v3471_v30, %v2631_v31  ;;  %v3472_v36 = vpop.f32.mrb[50].mxu0  ;;  %v2618_v24 = vpop.f32.mrb[63].mxu1  ;;  %v3581_v30 = vld [vmem:[%s4458_s1 + $0x98] sm:$0xff]   ;;  %v3116_v11 = vld [vmem:[%s4459_s2 + $0x26] ss:$0 sm:$0xff] }
0x11e5   : > { %v2691_v37 = vadd.f32 %v2677_v34, %v2629_v33  ;;  %v2630_v38 = vadd.f32 %v2618_v24, %v2560_v26  ;;  %v2680_v23 = vpop.f32.mrb[51].mxu0  ;;  %3481 = vmatprep.subr.bf16.mxu0 %v3581_v30  ;;  %v3583_v33 = vld [vmem:[%s4458_s1 + $0xa8] sm:$0xff]   ;;  %v3584_v34 = vld [vmem:[%s4458_s1 + $0xb0] sm:$0xff]  }
0x11e6   : > { %v2696_v25 = vadd.f32 %v2693_v35, %v4129_v47  ;;  %3482 = vmatpush3.bf16.msra.mxu0 %v3581_v30 }
0x11e7   : > { %v2694_v32 = vadd.f32 %v2691_v37, %v4126_v45  ;;  %v2692_v60 = vadd.f32 %v2680_v23, %v2630_v38  ;;  %3483 = vmatprep.subr.bf16.mxu0 %v3582_v27 }
0x11e8   : > { %v2703_v50 = vadd.f32 %v3113_v21, %v2696_v25 }
0x11e9   : > { %v4389_v41 = vadd.f32 %v3113_v21, %v2694_v32  ;;  %v2695_v42 = vadd.f32 %v2692_v60, %v4131_v49 }
0x11ea   : > { %v2710_v6 = vsel %vm296_vm1, %v2703_v50, 0.0  ;;  %3484 = vmatpush3.bf16.msra.mxu0 %v3582_v27 }
0x11eb   : > { %v2704_v44 = vsel %vm289_vm2, %v4389_v41, 0.0  ;;  %v2702_v46 = vadd.f32 %v3113_v21, %v2695_v42  ;;  %3485 = vmatprep.subr.bf16.mxu0 %v3583_v33 }
0x11ec   : > { %2705 = vadd.xlane.f32.xlu0 %v2704_v44 }
0x11ed   : > { %v2707_v51 = vsel %vm289_vm2, %v2702_v46, 0.0 }
0x11ee   : > { %2708 = vadd.xlane.f32.xlu1 %v2707_v51  ;;  %3486 = vmatpush3.bf16.msra.mxu0 %v3583_v33  ;;  %v2943_v33 = vld [vmem:[%s4459_s2 + $0x2b] sm:$0x1] }
0x11ef   : > { %3487 = vmatprep.subr.bf16.mxu0 %v3584_v34 }
0x11f0   : > { %2711 = vadd.xlane.f32.xlu0 %v2710_v6 }
0x11f2   : > { %3488 = vmatpush3.bf16.msra.mxu0 %v3584_v34 }
0x1279   : > { %v2706_v47 = vpop.xlane.xlu0 %2705 }
0x127a   : > { %v2713_v52 = vmul.f32 0.03125, %v2706_v47 }
0x127b   : > { %v2709_v45 = vpop.xlane.xlu1 %2708 }
0x127c   : > { %v2716_v53 = vsub.f32 %v4389_v41, %v2713_v52  ;;  %v2714_v1 = vmul.f32 0.03125, %v2709_v45 }
0x127d   : > { %v2712_v39 = vpop.xlane.xlu0 %2711 }
0x127e   : > { %v2717_v49 = vsub.f32 %v2702_v46, %v2714_v1  ;;  %v2715_v56 = vmul.f32 0.03125, %v2712_v39  ;;  %v2719_v40 = vmul.f32 %v2716_v53, %v2716_v53 }
0x1280   : > { %v2718_v14 = vsub.f32 %v2703_v50, %v2715_v56  ;;  %v2722_v58 = vsel %vm289_vm2, %v2719_v40, 0.0  ;;  %v2720_v61 = vmul.f32 %v2717_v49, %v2717_v49 }
0x1281   : > { %2723 = vadd.xlane.f32.xlu0 %v2722_v58 }
0x1282   : > { %v2721_v63 = vmul.f32 %v2718_v14, %v2718_v14  ;;  %v2725_v43 = vsel %vm289_vm2, %v2720_v61, 0.0 }
0x1284   : > { %v2728_v0 = vsel %vm296_vm1, %v2721_v63, 0.0 }
0x1285   : > { %2726 = vadd.xlane.f32.xlu0 %v2725_v43  ;;  %2729 = vadd.xlane.f32.xlu1 %v2728_v0 }
0x130e   : > { %v2724_v4 = vpop.xlane.xlu0 %2723 }
0x130f   : > { %v2731_v7 = vmul.f32 0.03125, %v2724_v4 }
0x1311   : > { %v2734_v48 = vadd.f32 1e-06, %v2731_v7 }
0x1312   : > { %v2730_v55 = vpop.xlane.xlu1 %2729  ;;  %v2727_v62 = vpop.xlane.xlu0 %2726 }
0x1313   : > { %3705 = vrsqrt.f32 %v2734_v48  ;;  %v2733_v9 = vmul.f32 0.03125, %v2730_v55  ;;  %v2732_v10 = vmul.f32 0.03125, %v2727_v62  ;;  %v3127_v62 = vld [vmem:[%s4459_s2 + $0x27] ss:$0 sm:$0xff] }
0x1315   : > { %v2736_v12 = vadd.f32 1e-06, %v2733_v9  ;;  %v2735_v57 = vadd.f32 1e-06, %v2732_v10 }
0x1317   : > { %3707 = vrsqrt.f32 %v2736_v12 }
0x1318   : > { %3709 = vrsqrt.f32 %v2735_v57 }
0x131d   : > { %v3706_v54 = vpop.eup %3705 }
0x131e   : > { %v2740_v59 = vmul.f32 %v3706_v54, %v2716_v53 }
0x1320   : > { %v2747_v20 = vmul.f32 %v3114_v13, %v2740_v59 }
0x1321   : > { %v3708_v16 = vpop.eup %3707 }
0x1322   : > { %v3710_v8 = vpop.eup %3709  ;;  %v2742_v15 = vmul.f32 %v3708_v16, %v2718_v14  ;;  %v2754_v28 = vadd.f32 %v3115_v5, %v2747_v20 }
0x1323   : > { %v2741_v19 = vmul.f32 %v3710_v8, %v2717_v49 }
0x1324   : > { %v2749_v22 = vmul.f32 %v3114_v13, %v2742_v15 }
0x1325   : > { %v2748_v17 = vmul.f32 %v3114_v13, %v2741_v19 }
0x1326   : > { %v2756_v18 = vadd.f32 %v3115_v5, %v2749_v22 }
0x1327   : > { %v2755_v26 = vadd.f32 %v3115_v5, %v2748_v17 }
0x1328   : > { %v2758_v29 = vpack.c.bf16 %v2756_v18, %v2756_v18 }
0x1329   : > { %v2757_v31 = vpack.c.bf16 %v2755_v26, %v2754_v28  ;;  %v2941_v28 = vld [vmem:[%s4459_s2 + $0x29] sm:$0x1] }
0x132b   : > { %3477 = vmatprep.mubr.msk.bf16.mxu1 %vm289_vm2, %v2757_v31 }
0x132c   : > { %3478 = vmatmul.mubr.msk.bf16.vlgmr.msra.gmra.mrb[64].mxu1 %vm289_vm2, %v2758_v29  ;;  %v2942_v29 = vld [vmem:[%s4459_s2 + $0x2a] sm:$0x1] }
0x13ff   : > { %v3479_v35 = vpop.f32.mrb[64].mxu1 }
0x1400   : > { %v2824_v36 = vadd.f32 %v3479_v35, %v3116_v11  ;;  %v2815_v24 = vpop.f32.mrb[65].mxu1 }
0x1401   : > { %v2816_v37 = vadd.f32 %v3116_v11, %v2815_v24  ;;  %v3480_v38 = vpop.f32.mrb[66].mxu1 }
0x1402   : > { %v2831_v23 = vmul.f32 %v2824_v36, %v2824_v36  ;;  %v2818_v21 = vpop.f32.mrb[67].mxu1 }
0x1403   : > { %v2829_v25 = vmul.f32 %v2816_v37, %v2816_v37  ;;  %v2819_v32 = vadd.f32 %v3116_v11, %v2818_v21 }
0x1404   : > { %v2834_v60 = vmul.f32 %v2831_v23, %v2824_v36 }
0x1405   : > { %v2832_v42 = vmul.f32 %v2829_v25, %v2816_v37  ;;  %v2830_v44 = vmul.f32 %v2819_v32, %v2819_v32 }
0x1406   : > { %v2837_v46 = vmul.f32 0.044715, %v2834_v60 }
0x1407   : > { %v2835_v50 = vmul.f32 0.044715, %v2832_v42  ;;  %v2833_v51 = vmul.f32 %v2830_v44, %v2819_v32 }
0x1408   : > { %v2840_v6 = vadd.f32 %v2837_v46, %v2824_v36 }
0x1409   : > { %v2838_v47 = vadd.f32 %v2835_v50, %v2816_v37  ;;  %v2836_v52 = vmul.f32 0.044715, %v2833_v51 }
0x140a   : > { %v2843_v45 = vmul.f32 0.7978846, %v2840_v6 }
0x140b   : > { %v2841_v53 = vmul.f32 0.7978846, %v2838_v47  ;;  %v2839_v1 = vadd.f32 %v2836_v52, %v2819_v32 }
0x140c   : > { %3711 = vtanh.f32 %v2843_v45 }
0x140d   : > { %3713 = vtanh.f32 %v2841_v53  ;;  %v2842_v39 = vmul.f32 0.7978846, %v2839_v1 }
0x140f   : > { %3715 = vtanh.f32 %v2842_v39 }
0x1416   : > { %v3712_v49 = vpop.eup %3711 }
0x1417   : > { %v3714_v56 = vpop.eup %3713  ;;  %v2849_v40 = vadd.f32 1.0, %v3712_v49 }
0x1418   : > { %v2847_v14 = vadd.f32 1.0, %v3714_v56 }
0x1419   : > { %v3716_v58 = vpop.eup %3715  ;;  %v2852_v61 = vmul.f32 0.5, %v2849_v40 }
0x141a   : > { %v2850_v63 = vmul.f32 0.5, %v2847_v14  ;;  %v2848_v43 = vadd.f32 1.0, %v3716_v58 }
0x141b   : > { %v2855_v2 = vmul.f32 %v2852_v61, %v2824_v36 }
0x141c   : > { %v2851_v0 = vmul.f32 0.5, %v2848_v43  ;;  %v2853_v3 = vmul.f32 %v2850_v63, %v2816_v37 }
0x141d   : > { %v2857_v48 = vpack.c.bf16 %v2855_v2, %v2855_v2 }
0x141e   : > { %v2854_v4 = vmul.f32 %v2851_v0, %v2819_v32 }
0x1420   : > { %v2856_v7 = vpack.c.bf16 %v2854_v4, %v2853_v3 }
0x1422   : > { %3489 = vmatprep.mubr.msk.bf16.mxu0 %vm1544_vm8, %v2856_v7 }
0x1423   : > { %3490 = vmatmul.mubr.msk.bf16.vlgmr.msra.gmra.mrb[52].mxu0 %vm1544_vm8, %v2857_v48 }
0x14f6   : > { %v3491_v55 = vpop.f32.mrb[52].mxu0 }
0x14f7   : > { %v2922_v9 = vpop.f32.mrb[53].mxu0 }
0x14f8   : > { %v2934_v10 = vadd.f32 %v2922_v9, %v4389_v41  ;;  %v3492_v12 = vpop.f32.mrb[54].mxu0  ;;  %v2940_v41 = vld [vmem:[%s4459_s2 + $0x28] sm:$0x1] }
0x14f9   : > { %v2925_v57 = vpop.f32.mrb[55].mxu0 }
0x14fa   : > { %v2939_v54 = vadd.f32 %v3127_v62, %v2934_v10 }
0x14fc   : > { %v2944_v59 = vsel %vm296_vm1, %v2939_v54, 0.0 }
0x14fd   : > { %2945 = vadd.xlane.f32.xlu0 %v2944_v59 }
0x158a   : > { %v2946_v13 = vpop.xlane.xlu0 %2945 }
0x158b   : > { %v2947_v16 = vmul.f32 0.03125, %v2946_v13 }
0x158d   : > { %v2948_v8 = vsub.f32 %v2939_v54, %v2947_v16 }
0x158f   : > { %v2949_v15 = vmul.f32 %v2948_v8, %v2948_v8 }
0x1591   : > { %v2950_v19 = vsel %vm296_vm1, %v2949_v15, 0.0 }
0x1592   : > { %2951 = vadd.xlane.f32.xlu1 %v2950_v19 }
0x161f   : > { %v2952_v20 = vpop.xlane.xlu1 %2951 }
0x1620   : > { %v2953_v5 = vmul.f32 0.03125, %v2952_v20 }
0x1622   : > { %v2954_v22 = vadd.f32 1e-06, %v2953_v5 }
0x1624   : > { %3717 = vrsqrt.f32 %v2954_v22 }
0x162e   : > { %v3718_v17 = vpop.eup %3717 }
0x162f   : > { %v2956_v18 = vmul.f32 %v3718_v17, %v2948_v8 }
0x1631   : > { %v2957_v26 = vmul.f32 %v2956_v18, %v2940_v41 }
0x1633   : > { %v2958_v31 = vadd.f32 %v2957_v26, %v2941_v28 }
0x1635   : > { %v2959_v30 = vmul.f32 %v2958_v31, %v2942_v29 }
0x1637   : > { %v2960_v27 = vsel %vm296_vm1, %v2959_v30, 0.0 }
0x1638   : > { %2961 = vadd.xlane.f32.xlu0 %v2960_v27 }
0x16c5   : > { %v2962_v34 = vpop.xlane.xlu0 %2961 }
0x16c6   : > { %v2963_v11 = vadd.f32 %v2962_v34, %v2943_v33 }
0x16c8   : > { %v2964_v35 = vsub.f32 0.0, %v2963_v11 }
0x16ca   : > { %v2965_v36 = vmul.f32 1.442695, %v2964_v35 }
0x16cc   : > { %3719 = vpow2.f32 %v2965_v36 }
0x16d6   : > { %v3720_v24 = vpop.eup %3719 }
0x16d7   : > { %v2967_v37 = vadd.f32 1.0, %v3720_v24 }
0x16d9   : > { %3721 = vrcp.f32 %v2967_v37 }
0x16e3   : > { %v3722_v38 = vpop.eup %3721 }
0x16e4   : > { %2972 = vperm.xlu1 %3562, %v3722_v38  }
0x1763   : > { %v2973_v23 = vpop.permute.xlu1 %2972 }
0x1764   : > { %2975 = vst [vmem:[%s166_s30] sm:$0x1] %v2973_v23 }
0x1765 PF: > { %s13_s12 = sadd.s32 1, %s3729_s12  }
0x1766   : > { %p10_p4 = scmp.ge.s32.totalorder %s13_s12, 4  }
0x1768   :  { %12 = sbr.rel (!%p10_p4) target bundleno = 1 (0x1), region = 62 }

</bundles_post_ra>
